<compile_context>
chip_gen: v7x
topology: tpu7x:2x2x1
jax: 0.10.0
libtpu: 0.0.40
codegen_flags: <defaults>
</compile_context>

<pallas_src>
import math
from functools import partial

import jax
import jax.numpy as jnp
from jax import lax
from jax.experimental import pallas as pl
from jax.experimental.pallas import tpu as pltpu
import numpy as np


def convlstm_kernel(patch_ref, c_ref, fw_ref, wcc_ref, hout_ref, cout_ref, z_ref):
    # patch_ref: (Kp, chunk)   bf16 im2col patches of [x ; h] (+ ones row, zero pad)
    # c_ref:     (Ch, chunk)   f32 previous cell state (channels on sublanes, pixels on lanes)
    # fw_ref:    (C4, Kp)      bf16 fused conv_x|conv_h weights (+ bias column, zero pad)
    # wcc_ref:   (3*Ch, chunk) f32 peephole weights [ci; cf; co], tiled over batch
    # hout_ref:  (Ch, chunk)   f32
    # cout_ref:  (Ch, chunk)   f32
    # z_ref:     (C4, chunk)   f32 VMEM scratch for the matmul result
    C4 = fw_ref.shape[0]
    Ch = C4 // 4

    # Single fused im2col matmul on the MXU (bf16 operands, f32 accumulate).
    # z holds conv_x(x) + conv_h(h) + bx + bh for all four gates; stage it in
    # VMEM scratch so the elementwise tail only keeps one gate slice live.
    z_ref[...] = jnp.dot(fw_ref[...], patch_ref[...],
                         preferred_element_type=jnp.float32)

    c_prev = c_ref[...]                                    # (Ch, chunk), f32, lane-dense

    # Consume one (Ch, chunk) gate slice at a time to bound vreg live ranges.
    i = jax.nn.sigmoid(z_ref[pl.ds(0 * Ch, Ch), :]
                       + wcc_ref[pl.ds(0 * Ch, Ch), :] * c_prev)
    g = jnp.tanh(z_ref[pl.ds(2 * Ch, Ch), :])
    ig = i * g                                             # i, g dead after this
    f = jax.nn.sigmoid(z_ref[pl.ds(1 * Ch, Ch), :]
                       + wcc_ref[pl.ds(1 * Ch, Ch), :] * c_prev)
    c_new = f * c_prev + ig
    cout_ref[...] = c_new.astype(cout_ref.dtype)

    # Output-gate peephole is purely additive (matches the PyTorch module).
    o = jax.nn.sigmoid(z_ref[pl.ds(3 * Ch, Ch), :]
                       + wcc_ref[pl.ds(2 * Ch, Ch), :])
    hout_ref[...] = (o * jnp.tanh(c_new)).astype(hout_ref.dtype)


@partial(jax.jit, static_argnames=("padding", "lane_splits"))
def convlstm_cell_forward(x, h, c, wx_oihw, bx, wh_oihw, bh, wcc, padding,
                          lane_splits=1):
    """ConvLSTMCell.forward. x/h/c are NCHW; conv weights are OIHW (PyTorch)."""
    B, Cin, H, W = x.shape
    Ch = h.shape[1]
    C4 = 4 * Ch
    KH, KW = wx_oihw.shape[2], wx_oihw.shape[3]
    p = padding
    HW = H * W
    N = B * HW                               # batch packed onto the lane axis
    Cfull = Cin + Ch
    K = KH * KW * Cfull
    Kp = ((K + 1 + 127) // 128) * 128        # +1 bias row, pad to lane multiple
    dtype = x.dtype
    mm_dtype = jnp.bfloat16                  # MXU-operand dtype

    # Lane-split grid: each chunk must be a multiple of 128 lanes.
    ns = lane_splits
    if N % (128 * ns) != 0:
        ns = 1
    chunk = N // ns

    # --- glue: fuse x and h along channels, cast to bf16, pad spatially and
    #     im2col so the kernel sees one (Kp, B*HW) bf16 patch operand with the
    #     B*HW pixel axis lane-dense (lane order: batch-major). ---
    xh = jnp.concatenate([x, h], axis=1).astype(mm_dtype)         # (B, Cfull, H, W)
    xh_pad = jnp.pad(xh, ((0, 0), (0, 0), (p, p), (p, p)))
    taps = [xh_pad[:, :, kh:kh + H, kw:kw + W].reshape(B, Cfull, HW)
            for kh in range(KH) for kw in range(KW)]
    pat = jnp.concatenate(taps, axis=1)                            # (B, K, HW)
    pat = jnp.transpose(pat, (1, 0, 2)).reshape(K, N)              # (K, B*HW)
    patches = jnp.concatenate(
        [pat,
         jnp.ones((1, N), mm_dtype),                               # bias row
         jnp.zeros((Kp - K - 1, N), mm_dtype)], axis=0)            # (Kp, N)

    # --- glue: fused weight (C4, Kp), tap-major / channel-minor to match the
    #     patch row order; (bx+bh) summed in f32 then cast once to bf16. ---
    w_cat = jnp.concatenate([wx_oihw, wh_oihw], axis=1)            # (C4, Cfull, KH, KW)
    fw = jnp.transpose(w_cat, (0, 2, 3, 1)).reshape(C4, K)
    fw_p = jnp.concatenate(
        [fw.astype(mm_dtype),
         (bx + bh).astype(mm_dtype)[:, None],
         jnp.zeros((C4, Kp - K - 1), mm_dtype)], axis=1)           # (C4, Kp)

    # Cell state and peephole weights stay f32 (elementwise math is f32).
    c_flat = jnp.transpose(c.reshape(B, Ch, HW), (1, 0, 2)).reshape(Ch, N)
    wcc_flat = jnp.tile(wcc.reshape(3 * Ch, HW), (1, B))           # (3*Ch, N)

    h_flat, c_out_flat = pl.pallas_call(
        convlstm_kernel,
        grid=(ns,),
        in_specs=[
            pl.BlockSpec((Kp, chunk), lambda s: (0, s)),
            pl.BlockSpec((Ch, chunk), lambda s: (0, s)),
            pl.BlockSpec((C4, Kp), lambda s: (0, 0)),          # resident weights
            pl.BlockSpec((3 * Ch, chunk), lambda s: (0, s)),
        ],
        out_specs=[
            pl.BlockSpec((Ch, chunk), lambda s: (0, s)),
            pl.BlockSpec((Ch, chunk), lambda s: (0, s)),
        ],
        out_shape=[
            jax.ShapeDtypeStruct((Ch, N), dtype),
            jax.ShapeDtypeStruct((Ch, N), dtype),
        ],
        scratch_shapes=[pltpu.VMEM((C4, chunk), jnp.float32)],   # staged matmul result
        compiler_params=pltpu.CompilerParams(
            dimension_semantics=("parallel",),
            vmem_limit_bytes=32 * 1024 * 1024),
    )(patches, c_flat, fw_p, wcc_flat)

    # (Ch, B*HW) -> (B, Ch, H, W)
    h_out = jnp.transpose(h_flat.reshape(Ch, B, HW), (1, 0, 2)).reshape(B, Ch, H, W)
    c_out = jnp.transpose(c_out_flat.reshape(Ch, B, HW), (1, 0, 2)).reshape(B, Ch, H, W)
    return h_out, c_out


def reference_forward(x, h, c, wx_oihw, bx, wh_oihw, bh, wcc, padding):
    """Pure-JAX/XLA reference reproducing the PyTorch forward (NCHW, f32)."""
    dn = ("NCHW", "OIHW", "NCHW")
    pad = [(padding, padding), (padding, padding)]
    xg = lax.conv_general_dilated(x, wx_oihw, (1, 1), pad,
                                  dimension_numbers=dn) + bx[None, :, None, None]
    hg = lax.conv_general_dilated(h, wh_oihw, (1, 1), pad,
                                  dimension_numbers=dn) + bh[None, :, None, None]
    xi, xf, xc, xo = jnp.split(xg, 4, axis=1)
    hi, hf, hc, ho = jnp.split(hg, 4, axis=1)
    ci, cf, co = jnp.split(wcc, 3, axis=0)
    i = jax.nn.sigmoid(xi + hi + ci * c)
    f = jax.nn.sigmoid(xf + hf + cf * c)
    c_new = f * c + i * jnp.tanh(xc + hc)
    o = jax.nn.sigmoid(xo + ho + co)
    h_new = o * jnp.tanh(c_new)
    return h_new, c_new


def _default_lane_splits():
    # v7x has 2 TensorCores per chip -> keep a 2-wide parallel lane-split axis.
    # Single-TC v5e/v6e prefer one grid step (no serial per-step overhead).
    try:
        kind = jax.devices()[0].device_kind.lower()
    except Exception:
        return 2
    return 2 if "v7" in kind else 1


if __name__ == "__main__":
    # Module hyperparameters (small, consistent with the PyTorch module).
    batch = 2
    input_channel = 4
    hidden_channel = 32
    kernel_size = 3
    image_size = (16, 16)
    padding = 1
    H, W = image_size

    key = jax.random.PRNGKey(0)
    keys = jax.random.split(key, 8)
    stdv = 1.0 / math.sqrt(hidden_channel)

    # Deterministic parameter init (uniform(-stdv, stdv), like reset_parameters).
    # PyTorch-native OIHW conv weights.
    wx = jax.random.uniform(keys[0], (4 * hidden_channel, input_channel,
                                      kernel_size, kernel_size),
                            jnp.float32, -stdv, stdv)
    bx = jax.random.uniform(keys[1], (4 * hidden_channel,), jnp.float32,
                            -stdv, stdv)
    wh = jax.random.uniform(keys[2], (4 * hidden_channel, hidden_channel,
                                      kernel_size, kernel_size),
                            jnp.float32, -stdv, stdv)
    bh = jax.random.uniform(keys[3], (4 * hidden_channel,), jnp.float32,
                            -stdv, stdv)
    wcc = jax.random.uniform(keys[4], (3 * hidden_channel, H, W), jnp.float32,
                             -stdv, stdv)

    # Example inputs (PyTorch NCHW convention).
    x = jax.random.normal(keys[5], (batch, input_channel, H, W), jnp.float32)
    h0 = jax.random.normal(keys[6], (batch, hidden_channel, H, W), jnp.float32)
    c0 = jax.random.normal(keys[7], (batch, hidden_channel, H, W), jnp.float32)

    lane_splits = _default_lane_splits()

    h_out, c_out = convlstm_cell_forward(x, h0, c0, wx, bx, wh, bh, wcc,
                                         padding=padding,
                                         lane_splits=lane_splits)
    h_out = jax.block_until_ready(h_out)
    c_out = jax.block_until_ready(c_out)

    h_ref, c_ref = reference_forward(x, h0, c0, wx, bx, wh, bh, wcc, padding)

    # Tolerance loosened for bf16 MXU operands (accumulation and all gate math
    # remain f32).
    np.testing.assert_allclose(np.asarray(h_out), np.asarray(h_ref),
                               rtol=2e-2, atol=2e-2)
    np.testing.assert_allclose(np.asarray(c_out), np.asarray(c_ref),
                               rtol=2e-2, atol=2e-2)
    print("KERNEL_OK")
</pallas_src>

<mosaic_0001>
module attributes {stable_mosaic.version = 11 : i64} {
  func.func @convlstm_kernel(%arg0: i32, %arg1: memref<384x512xbf16, #tpu.memory_space<vmem>>, %arg2: memref<32x512xf32, #tpu.memory_space<vmem>>, %arg3: memref<128x384xbf16, #tpu.memory_space<vmem>>, %arg4: memref<96x512xf32, #tpu.memory_space<vmem>>, %arg5: memref<32x512xf32, #tpu.memory_space<vmem>>, %arg6: memref<32x512xf32, #tpu.memory_space<vmem>>, %arg7: memref<128x512xf32, #tpu.memory_space<vmem>>) attributes {dimension_semantics = [#tpu.dimension_semantics<parallel>], iteration_bounds = array<i64: 1>, scalar_prefetch = 0 : i64, scratch_operands = 1 : i64, tpu.core_type = #tpu.core_type<tc>, window_params = [{transform_indices = @transform_0, window_bounds = array<i64: 384, 512>}, {transform_indices = @transform_1, window_bounds = array<i64: 32, 512>}, {pipeline_mode = #tpu.pipeline_mode<synchronous>, transform_indices = @transform_2, window_bounds = array<i64: 128, 384>}, {transform_indices = @transform_3, window_bounds = array<i64: 96, 512>}, {transform_indices = @transform_4, window_bounds = array<i64: 32, 512>}, {transform_indices = @transform_5, window_bounds = array<i64: 32, 512>}]} {
    %c0 = arith.constant 0 : index
    %c0_0 = arith.constant 0 : index
    %0 = vector.load %arg3[%c0, %c0_0] : memref<128x384xbf16, #tpu.memory_space<vmem>>, vector<128x384xbf16>
    %c0_1 = arith.constant 0 : index
    %c0_2 = arith.constant 0 : index
    %1 = vector.load %arg1[%c0_1, %c0_2] : memref<384x512xbf16, #tpu.memory_space<vmem>>, vector<384x512xbf16>
    %cst = arith.constant dense<0.000000e+00> : vector<128x512xf32>
    %2 = tpu.matmul %0, %1, %cst {dimension_numbers = #tpu.dot_dimension_numbers<[1], [0], [0], [1], [0, 0, 1, 1], [], []>} : vector<128x384xbf16>, vector<384x512xbf16>, vector<128x512xf32> -> vector<128x512xf32>
    %c0_3 = arith.constant 0 : index
    %c0_4 = arith.constant 0 : index
    %3 = vector.load %arg7[%c0_3, %c0_4] : memref<128x512xf32, #tpu.memory_space<vmem>>, vector<128x512xf32>
    tpu.vector_store %arg7[%c0_3, %c0_4], %2 {strides = array<i32>} : memref<128x512xf32, #tpu.memory_space<vmem>>, vector<128x512xf32>,
    %c0_5 = arith.constant 0 : index
    %c0_6 = arith.constant 0 : index
    %4 = vector.load %arg2[%c0_5, %c0_6] : memref<32x512xf32, #tpu.memory_space<vmem>>, vector<32x512xf32>
    %c0_7 = arith.constant 0 : index
    %c0_8 = arith.constant 0 : index
    %5 = vector.load %arg7[%c0_7, %c0_8] : memref<128x512xf32, #tpu.memory_space<vmem>>, vector<32x512xf32>
    %c0_9 = arith.constant 0 : index
    %c0_10 = arith.constant 0 : index
    %6 = vector.load %arg4[%c0_9, %c0_10] : memref<96x512xf32, #tpu.memory_space<vmem>>, vector<32x512xf32>
    %7 = arith.mulf %6, %4 : vector<32x512xf32>
    %8 = arith.addf %5, %7 : vector<32x512xf32>
    %9 = arith.negf %8 : vector<32x512xf32>
    %10 = math.exp %9 : vector<32x512xf32>
    %cst_11 = arith.constant 1.000000e+00 : f32
    %11 = vector.broadcast %cst_11 : f32 to vector<32x512xf32>
    %12 = arith.addf %11, %10 : vector<32x512xf32>
    %13 = arith.divf %11, %12 : vector<32x512xf32>
    %c64 = arith.constant 64 : index
    %c0_12 = arith.constant 0 : index
    %14 = vector.load %arg7[%c64, %c0_12] : memref<128x512xf32, #tpu.memory_space<vmem>>, vector<32x512xf32>
    %15 = math.tanh %14 : vector<32x512xf32>
    %16 = arith.mulf %13, %15 : vector<32x512xf32>
    %c32 = arith.constant 32 : index
    %c0_13 = arith.constant 0 : index
    %17 = vector.load %arg7[%c32, %c0_13] : memref<128x512xf32, #tpu.memory_space<vmem>>, vector<32x512xf32>
    %c32_14 = arith.constant 32 : index
    %c0_15 = arith.constant 0 : index
    %18 = vector.load %arg4[%c32_14, %c0_15] : memref<96x512xf32, #tpu.memory_space<vmem>>, vector<32x512xf32>
    %19 = arith.mulf %18, %4 : vector<32x512xf32>
    %20 = arith.addf %17, %19 : vector<32x512xf32>
    %21 = arith.negf %20 : vector<32x512xf32>
    %22 = math.exp %21 : vector<32x512xf32>
    %cst_16 = arith.constant 1.000000e+00 : f32
    %23 = vector.broadcast %cst_16 : f32 to vector<32x512xf32>
    %24 = arith.addf %23, %22 : vector<32x512xf32>
    %25 = arith.divf %23, %24 : vector<32x512xf32>
    %26 = arith.mulf %25, %4 : vector<32x512xf32>
    %27 = arith.addf %26, %16 : vector<32x512xf32>
    %c0_17 = arith.constant 0 : index
    %c0_18 = arith.constant 0 : index
    %28 = vector.load %arg6[%c0_17, %c0_18] : memref<32x512xf32, #tpu.memory_space<vmem>>, vector<32x512xf32>
    tpu.vector_store %arg6[%c0_17, %c0_18], %27 {strides = array<i32>} : memref<32x512xf32, #tpu.memory_space<vmem>>, vector<32x512xf32>,
    %c96 = arith.constant 96 : index
    %c0_19 = arith.constant 0 : index
    %29 = vector.load %arg7[%c96, %c0_19] : memref<128x512xf32, #tpu.memory_space<vmem>>, vector<32x512xf32>
    %c64_20 = arith.constant 64 : index
    %c0_21 = arith.constant 0 : index
    %30 = vector.load %arg4[%c64_20, %c0_21] : memref<96x512xf32, #tpu.memory_space<vmem>>, vector<32x512xf32>
    %31 = arith.addf %29, %30 : vector<32x512xf32>
    %32 = arith.negf %31 : vector<32x512xf32>
    %33 = math.exp %32 : vector<32x512xf32>
    %cst_22 = arith.constant 1.000000e+00 : f32
    %34 = vector.broadcast %cst_22 : f32 to vector<32x512xf32>
    %35 = arith.addf %34, %33 : vector<32x512xf32>
    %36 = arith.divf %34, %35 : vector<32x512xf32>
    %37 = math.tanh %27 : vector<32x512xf32>
    %38 = arith.mulf %36, %37 : vector<32x512xf32>
    %c0_23 = arith.constant 0 : index
    %c0_24 = arith.constant 0 : index
    %39 = vector.load %arg5[%c0_23, %c0_24] : memref<32x512xf32, #tpu.memory_space<vmem>>, vector<32x512xf32>
    tpu.vector_store %arg5[%c0_23, %c0_24], %38 {strides = array<i32>} : memref<32x512xf32, #tpu.memory_space<vmem>>, vector<32x512xf32>,
    return
  }
  func.func @transform_0(%arg0: i32) -> (i32, i32) {
    %c0_i32 = arith.constant 0 : i32
    %c0_i32_0 = arith.constant 0 : i32
    return %c0_i32, %arg0 : i32, i32
  }
  func.func @transform_1(%arg0: i32) -> (i32, i32) {
    %c0_i32 = arith.constant 0 : i32
    %c0_i32_0 = arith.constant 0 : i32
    return %c0_i32, %arg0 : i32, i32
  }
  func.func @transform_2(%arg0: i32) -> (i32, i32) {
    %c0_i32 = arith.constant 0 : i32
    %c0_i32_0 = arith.constant 0 : i32
    %c0_i32_1 = arith.constant 0 : i32
    return %c0_i32, %c0_i32_0 : i32, i32
  }
  func.func @transform_3(%arg0: i32) -> (i32, i32) {
    %c0_i32 = arith.constant 0 : i32
    %c0_i32_0 = arith.constant 0 : i32
    return %c0_i32, %arg0 : i32, i32
  }
  func.func @transform_4(%arg0: i32) -> (i32, i32) {
    %c0_i32 = arith.constant 0 : i32
    %c0_i32_0 = arith.constant 0 : i32
    return %c0_i32, %arg0 : i32, i32
  }
  func.func @transform_5(%arg0: i32) -> (i32, i32) {
    %c0_i32 = arith.constant 0 : i32
    %c0_i32_0 = arith.constant 0 : i32
    return %c0_i32, %arg0 : i32, i32
  }
}

</mosaic_0001>

<bundles_post_ra>
// kernel: convlstm_cell_forward.1
= control target key start
LH: loop header
LB: loop body
LE: loop exit
PB: predicated region body
PF: predicated region fallthrough
CT: control target
= control target key end

     0   :  { %s3571_s0 = inlined_call_operand.vmem [shape: bf16[384,512], index: 0, kind: input, shape index: {}]   ;;  %s3572_s2 = inlined_call_operand.vmem [shape: bf16[128,384], index: 2, kind: input, shape index: {}]   ;;  %s3573_s1 = inlined_call_operand.vmem [shape: f32[32,512], index: 1, kind: input, shape index: {}]   ;;  %s3574_s3 = inlined_call_operand.vmem [shape: f32[96,512], index: 3, kind: input, shape index: {}]   ;;  %s3575_s5 = inlined_call_operand.vmem [shape: f32[32,512], index: 5, kind: output, shape index: {1}]   ;;  %s3576_s4 = inlined_call_operand.vmem [shape: f32[32,512], index: 4, kind: output, shape index: {0}]  }
   0x1   :  { %v2137_v0 = vld [vmem:[%s3571_s0 + $0x4] ss:$16 sps:$4 sm:$0xff]   ;;  %v2139_v1 = vld [vmem:[%s3571_s0 + $0xc] ss:$16 sps:$4 sm:$0xff]   ;;  %v2141_v2 = vld [vmem:[%s3571_s0] ss:$16 sps:$4 sm:$0xff]  }
   0x2   :  { %756 = vmatprep.subr.bf16.mxu0 %v2137_v0  ;;  %v2142_v3 = vld [vmem:[%s3571_s0 + $0x8] ss:$16 sps:$4 sm:$0xff]   ;;  %982 = vmatprep.subr.bf16.mxu1 %v2139_v1  ;;  %v2143_v4 = vld [vmem:[%s3571_s0 + $0x24] ss:$16 sps:$4 sm:$0xff]   ;;  %v2145_v5 = vld [vmem:[%s3571_s0 + $0x2c] ss:$16 sps:$4 sm:$0xff]  }
   0x3   :  { %757 = vmatpush1.bf16.msra.mxu0 %v2141_v2  ;;  %983 = vmatpush1.bf16.msra.mxu1 %v2142_v3  ;;  %v2147_v6 = vld [vmem:[%s3571_s0 + $0x20] ss:$16 sps:$4 sm:$0xff]   ;;  %v2148_v7 = vld [vmem:[%s3571_s0 + $0x28] ss:$16 sps:$4 sm:$0xff]   ;;  %v2149_v8 = vld [vmem:[%s3571_s0 + $0x44] ss:$16 sps:$4 sm:$0xff]  }
   0x4   :  { %758 = vmatprep.subr.bf16.mxu0 %v2143_v4  ;;  %984 = vmatprep.subr.bf16.mxu1 %v2145_v5  ;;  %v2151_v9 = vld [vmem:[%s3571_s0 + $0x4c] ss:$16 sps:$4 sm:$0xff]   ;;  %v2153_v10 = vld [vmem:[%s3571_s0 + $0x40] ss:$16 sps:$4 sm:$0xff]   ;;  %v2154_v11 = vld [vmem:[%s3571_s0 + $0x48] ss:$16 sps:$4 sm:$0xff]  }
   0x5   :  { %v2155_v12 = vld [vmem:[%s3571_s0 + $0x64] ss:$16 sps:$4 sm:$0xff]   ;;  %v2157_v13 = vld [vmem:[%s3571_s0 + $0x6c] ss:$16 sps:$4 sm:$0xff]   ;;  %v2159_v14 = vld [vmem:[%s3571_s0 + $0x60] ss:$16 sps:$4 sm:$0xff]  }
   0x6   :  { %v2160_v15 = vld [vmem:[%s3571_s0 + $0x68] ss:$16 sps:$4 sm:$0xff]   ;;  %v2161_v16 = vld [vmem:[%s3571_s0 + $0x84] ss:$16 sps:$4 sm:$0xff]   ;;  %v2163_v17 = vld [vmem:[%s3571_s0 + $0x8c] ss:$16 sps:$4 sm:$0xff]  }
   0x7   :  { %759 = vmatpush1.bf16.msra.mxu0 %v2147_v6  ;;  %985 = vmatpush1.bf16.msra.mxu1 %v2148_v7  ;;  %v2165_v18 = vld [vmem:[%s3571_s0 + $0x80] ss:$16 sps:$4 sm:$0xff]   ;;  %v2166_v19 = vld [vmem:[%s3571_s0 + $0x88] ss:$16 sps:$4 sm:$0xff]   ;;  %v2167_v20 = vld [vmem:[%s3571_s0 + $0xa4] ss:$16 sps:$4 sm:$0xff]  }
   0x8   :  { %760 = vmatprep.subr.bf16.mxu0 %v2149_v8  ;;  %986 = vmatprep.subr.bf16.mxu1 %v2151_v9  ;;  %v2169_v21 = vld [vmem:[%s3571_s0 + $0xac] ss:$16 sps:$4 sm:$0xff]   ;;  %v2171_v22 = vld [vmem:[%s3571_s0 + $0xa0] ss:$16 sps:$4 sm:$0xff]   ;;  %v2172_v23 = vld [vmem:[%s3571_s0 + $0xa8] ss:$16 sps:$4 sm:$0xff]  }
   0x9   :  { %v2173_v24 = vld [vmem:[%s3571_s0 + $0xc4] ss:$16 sps:$4 sm:$0xff]   ;;  %v2175_v25 = vld [vmem:[%s3571_s0 + $0xcc] ss:$16 sps:$4 sm:$0xff]   ;;  %v2177_v26 = vld [vmem:[%s3571_s0 + $0xc0] ss:$16 sps:$4 sm:$0xff]  }
   0xa   :  { %v2178_v27 = vld [vmem:[%s3571_s0 + $0xc8] ss:$16 sps:$4 sm:$0xff]   ;;  %v2179_v28 = vld [vmem:[%s3571_s0 + $0xe4] ss:$16 sps:$4 sm:$0xff]   ;;  %v2181_v29 = vld [vmem:[%s3571_s0 + $0xec] ss:$16 sps:$4 sm:$0xff]  }
   0xb   :  { %761 = vmatpush1.bf16.msra.mxu0 %v2153_v10  ;;  %987 = vmatpush1.bf16.msra.mxu1 %v2154_v11  ;;  %v2183_v30 = vld [vmem:[%s3571_s0 + $0xe0] ss:$16 sps:$4 sm:$0xff]   ;;  %v2184_v31 = vld [vmem:[%s3571_s0 + $0xe8] ss:$16 sps:$4 sm:$0xff]   ;;  %v2185_v32 = vld [vmem:[%s3571_s0 + $0x104] ss:$16 sps:$4 sm:$0xff]  }
   0xc   :  { %762 = vmatprep.subr.bf16.mxu0 %v2155_v12  ;;  %988 = vmatprep.subr.bf16.mxu1 %v2157_v13  ;;  %v2187_v33 = vld [vmem:[%s3571_s0 + $0x10c] ss:$16 sps:$4 sm:$0xff]   ;;  %v2189_v34 = vld [vmem:[%s3571_s0 + $0x100] ss:$16 sps:$4 sm:$0xff]   ;;  %v2190_v35 = vld [vmem:[%s3571_s0 + $0x108] ss:$16 sps:$4 sm:$0xff]  }
   0xd   :  { %v2191_v36 = vld [vmem:[%s3571_s0 + $0x124] ss:$16 sps:$4 sm:$0xff]   ;;  %v2193_v37 = vld [vmem:[%s3571_s0 + $0x12c] ss:$16 sps:$4 sm:$0xff]   ;;  %v2195_v38 = vld [vmem:[%s3571_s0 + $0x120] ss:$16 sps:$4 sm:$0xff]  }
   0xe   :  { %v2196_v39 = vld [vmem:[%s3571_s0 + $0x128] ss:$16 sps:$4 sm:$0xff]   ;;  %v2197_v40 = vld [vmem:[%s3571_s0 + $0x144] ss:$16 sps:$4 sm:$0xff]   ;;  %v2199_v41 = vld [vmem:[%s3571_s0 + $0x14c] ss:$16 sps:$4 sm:$0xff]  }
   0xf   :  { %763 = vmatpush1.bf16.msra.mxu0 %v2159_v14  ;;  %989 = vmatpush1.bf16.msra.mxu1 %v2160_v15  ;;  %v2201_v42 = vld [vmem:[%s3571_s0 + $0x140] ss:$16 sps:$4 sm:$0xff]   ;;  %v2202_v43 = vld [vmem:[%s3571_s0 + $0x148] ss:$16 sps:$4 sm:$0xff]   ;;  %v2203_v44 = vld [vmem:[%s3571_s0 + $0x164] ss:$16 sps:$4 sm:$0xff]  }
  0x10   :  { %764 = vmatprep.subr.bf16.mxu0 %v2161_v16  ;;  %990 = vmatprep.subr.bf16.mxu1 %v2163_v17  ;;  %v2205_v45 = vld [vmem:[%s3571_s0 + $0x16c] ss:$16 sps:$4 sm:$0xff]   ;;  %v2207_v46 = vld [vmem:[%s3571_s0 + $0x160] ss:$16 sps:$4 sm:$0xff]   ;;  %v2208_v47 = vld [vmem:[%s3571_s0 + $0x168] ss:$16 sps:$4 sm:$0xff]  }
  0x11   :  { %v2235_v48 = vld [vmem:[%s3572_s2 + $0x4] ss:$12 sps:$4 sm:$0xff]   ;;  %v2211_v50 = vld [vmem:[%s3571_s0 + $0x18c] ss:$16 sps:$4 sm:$0xff]   ;;  %v2214_v52 = vld [vmem:[%s3571_s0 + $0x188] ss:$16 sps:$4 sm:$0xff]  }
  0x12   :  { %v2209_v49 = vld [vmem:[%s3571_s0 + $0x184] ss:$16 sps:$4 sm:$0xff]   ;;  %788 = vmatprep.mubr.bf16.mxu0 %v2235_v48  ;;  %1014 = vmatprep.mubr.bf16.mxu1 %v2235_v48  ;;  %v2213_v51 = vld [vmem:[%s3571_s0 + $0x180] ss:$16 sps:$4 sm:$0xff]   ;;  %v2217_v54 = vld [vmem:[%s3571_s0 + $0x1ac] ss:$16 sps:$4 sm:$0xff]  }
  0x13   :  { %765 = vmatpush1.bf16.msra.mxu0 %v2165_v18  ;;  %991 = vmatpush1.bf16.msra.mxu1 %v2166_v19  ;;  %v2215_v53 = vld [vmem:[%s3571_s0 + $0x1a4] ss:$16 sps:$4 sm:$0xff]   ;;  %v2219_v55 = vld [vmem:[%s3571_s0 + $0x1a0] ss:$16 sps:$4 sm:$0xff]   ;;  %v2220_v56 = vld [vmem:[%s3571_s0 + $0x1a8] ss:$16 sps:$4 sm:$0xff]  }
  0x14   :  { %766 = vmatprep.subr.bf16.mxu0 %v2167_v20  ;;  %992 = vmatprep.subr.bf16.mxu1 %v2169_v21  ;;  %v2221_v57 = vld [vmem:[%s3571_s0 + $0x1c4] ss:$16 sps:$4 sm:$0xff]   ;;  %v2223_v58 = vld [vmem:[%s3571_s0 + $0x1cc] ss:$16 sps:$4 sm:$0xff]   ;;  %v2225_v59 = vld [vmem:[%s3571_s0 + $0x1c0] ss:$16 sps:$4 sm:$0xff]  }
  0x15   :  { %v2226_v60 = vld [vmem:[%s3571_s0 + $0x1c8] ss:$16 sps:$4 sm:$0xff]   ;;  %v2227_v61 = vld [vmem:[%s3571_s0 + $0x1e4] ss:$16 sps:$4 sm:$0xff]   ;;  %v2229_v62 = vld [vmem:[%s3571_s0 + $0x1ec] ss:$16 sps:$4 sm:$0xff]  }
  0x16   :  { %v2231_v63 = vld [vmem:[%s3571_s0 + $0x1e0] ss:$16 sps:$4 sm:$0xff]   ;;  %v2232_v0 = vld [vmem:[%s3571_s0 + $0x1e8] ss:$16 sps:$4 sm:$0xff]   ;;  %v2238_v1 = vld [vmem:[%s3571_s0 + $0x204] ss:$16 sps:$4 sm:$0xff]  }
  0x17   :  { %767 = vmatpush1.bf16.msra.mxu0 %v2171_v22  ;;  %993 = vmatpush1.bf16.msra.mxu1 %v2172_v23  ;;  %v2241_v2 = vld [vmem:[%s3571_s0 + $0x20c] ss:$16 sps:$4 sm:$0xff]   ;;  %v2236_v4 = vld [vmem:[%s3571_s0 + $0x200] ss:$16 sps:$4 sm:$0xff]   ;;  %v2239_v5 = vld [vmem:[%s3571_s0 + $0x208] ss:$16 sps:$4 sm:$0xff]  }
  0x18   :  { %768 = vmatprep.subr.bf16.mxu0 %v2173_v24  ;;  %994 = vmatprep.subr.bf16.mxu1 %v2175_v25  ;;  %v2233_v3 = vld [vmem:[%s3572_s2] ss:$12 sps:$4 sm:$0xff]   ;;  %v2242_v6 = vld [vmem:[%s3572_s2 + $0x1c] ss:$12 sps:$4 sm:$0xff]   ;;  %v2247_v7 = vld [vmem:[%s3571_s0 + $0x224] ss:$16 sps:$4 sm:$0xff]  }
  0x19   :  { %v2250_v8 = vld [vmem:[%s3571_s0 + $0x22c] ss:$16 sps:$4 sm:$0xff]   ;;  %v2245_v9 = vld [vmem:[%s3571_s0 + $0x220] ss:$16 sps:$4 sm:$0xff]   ;;  %v2248_v10 = vld [vmem:[%s3571_s0 + $0x228] ss:$16 sps:$4 sm:$0xff]  }
  0x1a   :  { %v2256_v11 = vld [vmem:[%s3571_s0 + $0x244] ss:$16 sps:$4 sm:$0xff]   ;;  %v2259_v12 = vld [vmem:[%s3571_s0 + $0x24c] ss:$16 sps:$4 sm:$0xff]   ;;  %v2254_v15 = vld [vmem:[%s3571_s0 + $0x240] ss:$16 sps:$4 sm:$0xff]  }
  0x1b   :  { %769 = vmatpush1.bf16.msra.mxu0 %v2177_v26  ;;  %995 = vmatpush1.bf16.msra.mxu1 %v2178_v27  ;;  %v2244_v13 = vld [vmem:[%s3572_s2 + $0x18] ss:$12 sps:$4 sm:$0xff]   ;;  %v2251_v14 = vld [vmem:[%s3572_s2 + $0x34] ss:$12 sps:$4 sm:$0xff]   ;;  %v2268_v18 = vld [vmem:[%s3571_s0 + $0x26c] ss:$16 sps:$4 sm:$0xff]  }
  0x1c   :  { %770 = vmatprep.subr.bf16.mxu0 %v2179_v28  ;;  %996 = vmatprep.subr.bf16.mxu1 %v2181_v29  ;;  %v2257_v16 = vld [vmem:[%s3571_s0 + $0x248] ss:$16 sps:$4 sm:$0xff]   ;;  %v2265_v17 = vld [vmem:[%s3571_s0 + $0x264] ss:$16 sps:$4 sm:$0xff]   ;;  %v2263_v19 = vld [vmem:[%s3571_s0 + $0x260] ss:$16 sps:$4 sm:$0xff]  }
  0x1d   :  { %v2266_v20 = vld [vmem:[%s3571_s0 + $0x268] ss:$16 sps:$4 sm:$0xff]   ;;  %v2253_v21 = vld [vmem:[%s3572_s2 + $0x30] ss:$12 sps:$4 sm:$0xff]   ;;  %v2274_v22 = vld [vmem:[%s3571_s0 + $0x284] ss:$16 sps:$4 sm:$0xff]  }
  0x1e   :  { %v2277_v23 = vld [vmem:[%s3571_s0 + $0x28c] ss:$16 sps:$4 sm:$0xff]   ;;  %v2272_v25 = vld [vmem:[%s3571_s0 + $0x280] ss:$16 sps:$4 sm:$0xff]   ;;  %v2275_v26 = vld [vmem:[%s3571_s0 + $0x288] ss:$16 sps:$4 sm:$0xff]  }
  0x1f   :  { %771 = vmatpush1.bf16.msra.mxu0 %v2183_v30  ;;  %997 = vmatpush1.bf16.msra.mxu1 %v2184_v31  ;;  %v2260_v24 = vld [vmem:[%s3572_s2 + $0x4c] ss:$12 sps:$4 sm:$0xff]   ;;  %v2283_v27 = vld [vmem:[%s3571_s0 + $0x2a4] ss:$16 sps:$4 sm:$0xff]   ;;  %v2281_v29 = vld [vmem:[%s3571_s0 + $0x2a0] ss:$16 sps:$4 sm:$0xff]  }
  0x20   :  { %772 = vmatprep.subr.bf16.mxu0 %v2185_v32  ;;  %998 = vmatprep.subr.bf16.mxu1 %v2187_v33  ;;  %v2286_v28 = vld [vmem:[%s3571_s0 + $0x2ac] ss:$16 sps:$4 sm:$0xff]   ;;  %v2284_v30 = vld [vmem:[%s3571_s0 + $0x2a8] ss:$16 sps:$4 sm:$0xff]   ;;  %v2292_v31 = vld [vmem:[%s3571_s0 + $0x2c4] ss:$16 sps:$4 sm:$0xff]  }
  0x21   :  { %v2295_v32 = vld [vmem:[%s3571_s0 + $0x2cc] ss:$16 sps:$4 sm:$0xff]   ;;  %v2262_v33 = vld [vmem:[%s3572_s2 + $0x48] ss:$12 sps:$4 sm:$0xff]   ;;  %v2569_v48 = vmov 0  }
  0x23   :  { %773 = vmatpush1.bf16.msra.mxu0 %v2189_v34  ;;  %999 = vmatpush1.bf16.msra.mxu1 %v2190_v35  ;;  %v2269_v34 = vld [vmem:[%s3572_s2 + $0x64] ss:$12 sps:$4 sm:$0xff]  }
  0x24   :  { %774 = vmatprep.subr.bf16.mxu0 %v2191_v36  ;;  %1000 = vmatprep.subr.bf16.mxu1 %v2193_v37  ;;  %v2290_v35 = vld [vmem:[%s3571_s0 + $0x2c0] ss:$16 sps:$4 sm:$0xff]   ;;  %v2293_v36 = vld [vmem:[%s3571_s0 + $0x2c8] ss:$16 sps:$4 sm:$0xff]   ;;  %v2301_v37 = vld [vmem:[%s3571_s0 + $0x2e4] ss:$16 sps:$4 sm:$0xff]  }
  0x27   :  { %775 = vmatpush1.bf16.msra.mxu0 %v2195_v38  ;;  %1001 = vmatpush1.bf16.msra.mxu1 %v2196_v39  ;;  %v2304_v38 = vld [vmem:[%s3571_s0 + $0x2ec] ss:$16 sps:$4 sm:$0xff]   ;;  %v2299_v39 = vld [vmem:[%s3571_s0 + $0x2e0] ss:$16 sps:$4 sm:$0xff]  }
  0x28   :  { %776 = vmatprep.subr.bf16.mxu0 %v2197_v40  ;;  %1002 = vmatprep.subr.bf16.mxu1 %v2199_v41  ;;  %v2302_v40 = vld [vmem:[%s3571_s0 + $0x2e8] ss:$16 sps:$4 sm:$0xff]   ;;  %v2271_v41 = vld [vmem:[%s3572_s2 + $0x60] ss:$12 sps:$4 sm:$0xff]  }
  0x2b   :  { %777 = vmatpush1.bf16.msra.mxu0 %v2201_v42  ;;  %1003 = vmatpush1.bf16.msra.mxu1 %v2202_v43  ;;  %v2278_v42 = vld [vmem:[%s3572_s2 + $0x7c] ss:$12 sps:$4 sm:$0xff]   ;;  %v2280_v43 = vld [vmem:[%s3572_s2 + $0x78] ss:$12 sps:$4 sm:$0xff]  }
  0x2c   :  { %778 = vmatprep.subr.bf16.mxu0 %v2203_v44  ;;  %1004 = vmatprep.subr.bf16.mxu1 %v2205_v45  ;;  %v2287_v44 = vld [vmem:[%s3572_s2 + $0x94] ss:$12 sps:$4 sm:$0xff]   ;;  %v2289_v45 = vld [vmem:[%s3572_s2 + $0x90] ss:$12 sps:$4 sm:$0xff]  }
  0x2f   :  { %779 = vmatpush1.bf16.msra.mxu0 %v2207_v46  ;;  %1005 = vmatpush1.bf16.msra.mxu1 %v2208_v47  ;;  %v2296_v46 = vld [vmem:[%s3572_s2 + $0xac] ss:$12 sps:$4 sm:$0xff]   ;;  %v2298_v47 = vld [vmem:[%s3572_s2 + $0xa8] ss:$12 sps:$4 sm:$0xff]  }
  0x30   :  { %780 = vmatprep.subr.bf16.mxu0 %v2209_v49  ;;  %1006 = vmatprep.subr.bf16.mxu1 %v2211_v50  ;;  %v2305_v49 = vld [vmem:[%s3572_s2 + $0x8] ss:$12 sps:$4 sm:$0xff]   ;;  %v2306_v50 = vld [vmem:[%s3572_s2 + $0x20] ss:$12 sps:$4 sm:$0xff]  }
  0x33   :  { %781 = vmatpush1.bf16.msra.mxu0 %v2213_v51  ;;  %1007 = vmatpush1.bf16.msra.mxu1 %v2214_v52  ;;  %v2307_v51 = vld [vmem:[%s3572_s2 + $0x38] ss:$12 sps:$4 sm:$0xff]   ;;  %v2308_v52 = vld [vmem:[%s3572_s2 + $0x50] ss:$12 sps:$4 sm:$0xff]  }
  0x34   :  { %782 = vmatprep.subr.bf16.mxu0 %v2215_v53  ;;  %1008 = vmatprep.subr.bf16.mxu1 %v2217_v54  ;;  %v2309_v53 = vld [vmem:[%s3572_s2 + $0x68] ss:$12 sps:$4 sm:$0xff]   ;;  %v2310_v54 = vld [vmem:[%s3572_s2 + $0x80] ss:$12 sps:$4 sm:$0xff]  }
  0x37   :  { %783 = vmatpush1.bf16.msra.mxu0 %v2219_v55  ;;  %1009 = vmatpush1.bf16.msra.mxu1 %v2220_v56  ;;  %v2311_v55 = vld [vmem:[%s3572_s2 + $0x98] ss:$12 sps:$4 sm:$0xff]   ;;  %v2312_v56 = vld [vmem:[%s3572_s2 + $0xb0] ss:$12 sps:$4 sm:$0xff]  }
  0x38   :  { %784 = vmatprep.subr.bf16.mxu0 %v2221_v57  ;;  %1010 = vmatprep.subr.bf16.mxu1 %v2223_v58  ;;  %v2963_v57 = vld [vmem:[%s3573_s1] sm:$0xff] }
  0x39   :  { %v1304_v58 = vld [vmem:[%s3574_s3] sm:$0xff] }
  0x3b   :  { %785 = vmatpush1.bf16.msra.mxu0 %v2225_v59  ;;  %1011 = vmatpush1.bf16.msra.mxu1 %v2226_v60  ;;  %v2971_v59 = vld [vmem:[%s3573_s1 + $0x10] sm:$0xff] }
  0x3c   :  { %786 = vmatprep.subr.bf16.mxu0 %v2227_v61  ;;  %1012 = vmatprep.subr.bf16.mxu1 %v2229_v62  ;;  %v1306_v60 = vld [vmem:[%s3574_s3 + $0x10] sm:$0xff]  ;;  %v2979_v61 = vld [vmem:[%s3573_s1 + $0x8] sm:$0xff] }
  0x3d   :  { %v1305_v62 = vld [vmem:[%s3574_s3 + $0x8] sm:$0xff] }
  0x3f   :  { %787 = vmatpush1.bf16.msra.mxu0 %v2231_v63  ;;  %1013 = vmatpush1.bf16.msra.mxu1 %v2232_v0  ;;  %v2987_v63 = vld [vmem:[%s3573_s1 + $0x18] sm:$0xff] }
  0x40   :  { %869 = vmatprep.subr.bf16.mxu0 %v2238_v1  ;;  %1095 = vmatprep.subr.bf16.mxu1 %v2241_v2  ;;  %v1307_v0 = vld [vmem:[%s3574_s3 + $0x18] sm:$0xff]  ;;  %v2995_v1 = vld [vmem:[%s3573_s1 + $0x20] sm:$0xff] }
  0x41   :  { %v1308_v2 = vld [vmem:[%s3574_s3 + $0x20] sm:$0xff] }
  0x42   :  { %789 = vmatmul.mubr.bf16.vlgmr.msra.gmra.mrb[0].mxu0 %v2233_v3  ;;  %1015 = vmatmul.mubr.bf16.vlgmr.msra.gmra.mrb[0].mxu1 %v2233_v3  ;;  %v3003_v3 = vld [vmem:[%s3573_s1 + $0x30] sm:$0xff] }
  0x43   :  { %870 = vmatpush1.bf16.msra.mxu0 %v2236_v4  ;;  %1096 = vmatpush1.bf16.msra.mxu1 %v2239_v5  ;;  %v1310_v4 = vld [vmem:[%s3574_s3 + $0x30] sm:$0xff]  ;;  %v3011_v5 = vld [vmem:[%s3573_s1 + $0x28] sm:$0xff] }
  0x44   :  { %798 = vmatprep.mubr.bf16.mxu0 %v2242_v6  ;;  %1024 = vmatprep.mubr.bf16.mxu1 %v2242_v6  ;;  %v1320_v6 = vmul.f32 %v1304_v58, %v2963_v57 }
  0x45   :  { %871 = vmatprep.subr.bf16.mxu0 %v2247_v7  ;;  %1097 = vmatprep.subr.bf16.mxu1 %v2250_v8  ;;  %v1322_v7 = vmul.f32 %v1306_v60, %v2971_v59  ;;  %v1309_v8 = vld [vmem:[%s3574_s3 + $0x28] sm:$0xff] }
  0x47   :  { %872 = vmatpush1.bf16.msra.mxu0 %v2245_v9  ;;  %1098 = vmatpush1.bf16.msra.mxu1 %v2248_v10  ;;  %v3021_v9 = vld [vmem:[%s3573_s1 + $0x38] sm:$0xff] }
  0x48   :  { %873 = vmatprep.subr.bf16.mxu0 %v2256_v11  ;;  %1099 = vmatprep.subr.bf16.mxu1 %v2259_v12  ;;  %v1311_v10 = vld [vmem:[%s3574_s3 + $0x38] sm:$0xff]  ;;  %v1321_v11 = vmul.f32 %v1305_v62, %v2979_v61  ;;  %v1323_v12 = vmul.f32 %v1307_v0, %v2987_v63 }
  0x4a   :  { %799 = vmatmul.mubr.bf16.gmra.mrb[4].mxu0 %v2244_v13  ;;  %1025 = vmatmul.mubr.bf16.gmra.mrb[4].mxu1 %v2244_v13  ;;  %v1324_v13 = vmul.f32 %v1308_v2, %v2995_v1 }
  0x4b   :  { %808 = vmatprep.mubr.bf16.mxu0 %v2251_v14  ;;  %1034 = vmatprep.mubr.bf16.mxu1 %v2251_v14  ;;  %v1326_v14 = vmul.f32 %v1310_v4, %v3003_v3 }
  0x4c   :  { %874 = vmatpush1.bf16.msra.mxu0 %v2254_v15  ;;  %1100 = vmatpush1.bf16.msra.mxu1 %v2257_v16 }
  0x4d   :  { %875 = vmatprep.subr.bf16.mxu0 %v2265_v17  ;;  %1101 = vmatprep.subr.bf16.mxu1 %v2268_v18  ;;  %v1325_v17 = vmul.f32 %v1309_v8, %v3011_v5  ;;  %v1327_v18 = vmul.f32 %v1311_v10, %v3021_v9 }
  0x50   :  { %876 = vmatpush1.bf16.msra.mxu0 %v2263_v19  ;;  %1102 = vmatpush1.bf16.msra.mxu1 %v2266_v20 }
  0x51   :  { %877 = vmatprep.subr.bf16.mxu0 %v2274_v22  ;;  %1103 = vmatprep.subr.bf16.mxu1 %v2277_v23  ;;  %v3035_v23 = vld [vmem:[%s3573_s1 + $0x40] sm:$0xff] }
  0x52   :  { %809 = vmatmul.mubr.bf16.gmra.mrb[8].mxu0 %v2253_v21  ;;  %1035 = vmatmul.mubr.bf16.gmra.mrb[8].mxu1 %v2253_v21 }
  0x53   :  { %818 = vmatprep.mubr.bf16.mxu0 %v2260_v24  ;;  %1044 = vmatprep.mubr.bf16.mxu1 %v2260_v24 }
  0x54   :  { %878 = vmatpush1.bf16.msra.mxu0 %v2272_v25  ;;  %1104 = vmatpush1.bf16.msra.mxu1 %v2275_v26 }
  0x55   :  { %879 = vmatprep.subr.bf16.mxu0 %v2283_v27  ;;  %1105 = vmatprep.subr.bf16.mxu1 %v2286_v28  ;;  %v1312_v28 = vld [vmem:[%s3574_s3 + $0x40] sm:$0xff] }
  0x58   :  { %880 = vmatpush1.bf16.msra.mxu0 %v2281_v29  ;;  %1106 = vmatpush1.bf16.msra.mxu1 %v2284_v30  ;;  %v3043_v29 = vld [vmem:[%s3573_s1 + $0x50] sm:$0xff] }
  0x59   :  { %881 = vmatprep.subr.bf16.mxu0 %v2292_v31  ;;  %1107 = vmatprep.subr.bf16.mxu1 %v2295_v32  ;;  %3584 = vst [vmem:[#allocation3_spill] sm:$0xff] %v3043_v29  ;;  %v1314_v30 = vld [vmem:[%s3574_s3 + $0x50] sm:$0xff] }
  0x5a   :  { %819 = vmatmul.mubr.bf16.gmra.mrb[12].mxu0 %v2262_v33  ;;  %1045 = vmatmul.mubr.bf16.gmra.mrb[12].mxu1 %v2262_v33 }
  0x5b   :  { %828 = vmatprep.mubr.bf16.mxu0 %v2269_v34  ;;  %1054 = vmatprep.mubr.bf16.mxu1 %v2269_v34 }
  0x5c   :  { %882 = vmatpush1.bf16.msra.mxu0 %v2290_v35  ;;  %1108 = vmatpush1.bf16.msra.mxu1 %v2293_v36 }
  0x5d   :  { %883 = vmatprep.subr.bf16.mxu0 %v2301_v37  ;;  %1109 = vmatprep.subr.bf16.mxu1 %v2304_v38 }
  0x60   :  { %884 = vmatpush1.bf16.msra.mxu0 %v2299_v39  ;;  %1110 = vmatpush1.bf16.msra.mxu1 %v2302_v40 }
  0x62   :  { %829 = vmatmul.mubr.bf16.gmra.mrb[16].mxu0 %v2271_v41  ;;  %1055 = vmatmul.mubr.bf16.gmra.mrb[16].mxu1 %v2271_v41  ;;  %v3051_v41 = vld [vmem:[%s3573_s1 + $0x48] sm:$0xff] }
  0x63   :  { %838 = vmatprep.mubr.bf16.mxu0 %v2278_v42  ;;  %1064 = vmatprep.mubr.bf16.mxu1 %v2278_v42  ;;  %3585 = vst [vmem:[#allocation4_spill] sm:$0xff] %v3051_v41  ;;  %v1313_v42 = vld [vmem:[%s3574_s3 + $0x48] sm:$0xff] }
  0x6a   :  { %839 = vmatmul.mubr.bf16.gmra.mrb[20].mxu0 %v2280_v43  ;;  %1065 = vmatmul.mubr.bf16.gmra.mrb[20].mxu1 %v2280_v43 }
  0x6b   :  { %848 = vmatprep.mubr.bf16.mxu0 %v2287_v44  ;;  %1074 = vmatprep.mubr.bf16.mxu1 %v2287_v44  ;;  %v1328_v44 = vmul.f32 %v1312_v28, %v3035_v23 }
  0x72   :  { %849 = vmatmul.mubr.bf16.gmra.mrb[24].mxu0 %v2289_v45  ;;  %1075 = vmatmul.mubr.bf16.gmra.mrb[24].mxu1 %v2289_v45  ;;  %v1330_v45 = vmul.f32 %v1314_v30, %v3043_v29 }
  0x73   :  { %858 = vmatprep.mubr.bf16.mxu0 %v2296_v46  ;;  %1084 = vmatprep.mubr.bf16.mxu1 %v2296_v46  ;;  %v3061_v46 = vld [vmem:[%s3573_s1 + $0x58] sm:$0xff] }
  0x74   :  { %3586 = vst [vmem:[#allocation5_spill] sm:$0xff] %v3061_v46 }
  0x7a   :  { %859 = vmatmul.mubr.bf16.gmra.mrb[28].mxu0 %v2298_v47  ;;  %1085 = vmatmul.mubr.bf16.gmra.mrb[28].mxu1 %v2298_v47  ;;  %v1315_v47 = vld [vmem:[%s3574_s3 + $0x58] sm:$0xff] }
  0x7b   :  { %901 = vmatprep.mubr.bf16.mxu0 %v2569_v48  ;;  %1127 = vmatprep.mubr.bf16.mxu1 %v2569_v48 }
  0x82   :  { %902 = vmatmul.mubr.bf16.vlgmr.msra.gmra.mrb[0].mxu0 %v2305_v49  ;;  %1128 = vmatmul.mubr.bf16.vlgmr.msra.gmra.mrb[0].mxu1 %v2305_v49  ;;  %v3069_v49 = vld [vmem:[%s3573_s1 + $0x60] sm:$0xff] }
  0x83   :  { %911 = vmatprep.mubr.bf16.mxu0 %v2569_v48  ;;  %1137 = vmatprep.mubr.bf16.mxu1 %v2569_v48  ;;  %3587 = vst [vmem:[#allocation6_spill] sm:$0xff] %v3069_v49 }
  0x8a   :  { %912 = vmatmul.mubr.bf16.gmra.mrb[4].mxu0 %v2306_v50  ;;  %1138 = vmatmul.mubr.bf16.gmra.mrb[4].mxu1 %v2306_v50  ;;  %v1316_v50 = vld [vmem:[%s3574_s3 + $0x60] sm:$0xff] }
  0x8b   :  { %921 = vmatprep.mubr.bf16.mxu0 %v2569_v48  ;;  %1147 = vmatprep.mubr.bf16.mxu1 %v2569_v48  ;;  %v1332_v2 = vmul.f32 %v1316_v50, %v3069_v49  ;;  %v1513_v50 = vld [vmem:[%s3574_s3 + $0x88] sm:$0xff] }
  0x92   :  { %922 = vmatmul.mubr.bf16.gmra.mrb[8].mxu0 %v2307_v51  ;;  %1148 = vmatmul.mubr.bf16.gmra.mrb[8].mxu1 %v2307_v51 }
  0x93   :  { %931 = vmatprep.mubr.bf16.mxu0 %v2569_v48  ;;  %1157 = vmatprep.mubr.bf16.mxu1 %v2569_v48 }
  0x9a   :  { %932 = vmatmul.mubr.bf16.gmra.mrb[12].mxu0 %v2308_v52  ;;  %1158 = vmatmul.mubr.bf16.gmra.mrb[12].mxu1 %v2308_v52  ;;  %v1329_v52 = vmul.f32 %v1313_v42, %v3051_v41 }
  0x9b   :  { %941 = vmatprep.mubr.bf16.mxu0 %v2569_v48  ;;  %1167 = vmatprep.mubr.bf16.mxu1 %v2569_v48 }
  0xa2   :  { %942 = vmatmul.mubr.bf16.gmra.mrb[16].mxu0 %v2309_v53  ;;  %1168 = vmatmul.mubr.bf16.gmra.mrb[16].mxu1 %v2309_v53 }
  0xa3   :  { %951 = vmatprep.mubr.bf16.mxu0 %v2569_v48  ;;  %1177 = vmatprep.mubr.bf16.mxu1 %v2569_v48 }
  0xaa   :  { %952 = vmatmul.mubr.bf16.gmra.mrb[20].mxu0 %v2310_v54  ;;  %1178 = vmatmul.mubr.bf16.gmra.mrb[20].mxu1 %v2310_v54 }
  0xab   :  { %961 = vmatprep.mubr.bf16.mxu0 %v2569_v48  ;;  %1187 = vmatprep.mubr.bf16.mxu1 %v2569_v48 }
  0xb2   :  { %962 = vmatmul.mubr.bf16.gmra.mrb[24].mxu0 %v2311_v55  ;;  %1188 = vmatmul.mubr.bf16.gmra.mrb[24].mxu1 %v2311_v55 }
  0xb3   :  { %971 = vmatprep.mubr.bf16.mxu0 %v2569_v48  ;;  %1197 = vmatprep.mubr.bf16.mxu1 %v2569_v48 }
  0xba   :  { %972 = vmatmul.mubr.bf16.gmra.mrb[28].mxu0 %v2312_v56  ;;  %1198 = vmatmul.mubr.bf16.gmra.mrb[28].mxu1 %v2312_v56  ;;  %v1331_v56 = vmul.f32 %v1315_v47, %v3061_v46 }
 0x155   :  { %v903_v15 = vpop.f32.mrb[0].mxu0  ;;  %v1129_v16 = vpop.f32.mrb[0].mxu1 }
 0x156   :  { %v1336_v19 = vadd.f32 %v1320_v6, %v903_v15  ;;  %v1338_v20 = vadd.f32 %v1322_v7, %v1129_v16  ;;  %v905_v21 = vpop.f32.mrb[1].mxu0  ;;  %v1131_v22 = vpop.f32.mrb[1].mxu1 }
 0x157   :  { %v1337_v24 = vadd.f32 %v1321_v11, %v905_v21  ;;  %v1339_v25 = vadd.f32 %v1323_v12, %v1131_v22  ;;  %v907_v26 = vpop.f32.mrb[2].mxu0  ;;  %v1133_v27 = vpop.f32.mrb[2].mxu1 }
 0x158   :  { %v2024_v31 = vmul.f32 -1.442695, %v1336_v19  ;;  %v2026_v32 = vmul.f32 -1.442695, %v1338_v20  ;;  %v1340_v33 = vadd.f32 %v1324_v13, %v907_v26  ;;  %v1342_v34 = vadd.f32 %v1326_v14, %v1133_v27  ;;  %v909_v35 = vpop.f32.mrb[3].mxu0  ;;  %v1135_v36 = vpop.f32.mrb[3].mxu1 }
 0x159   :  { %v2025_v37 = vmul.f32 -1.442695, %v1337_v24  ;;  %v2027_v38 = vmul.f32 -1.442695, %v1339_v25  ;;  %v1341_v39 = vadd.f32 %v1325_v17, %v909_v35  ;;  %v1343_v40 = vadd.f32 %v1327_v18, %v1135_v36  ;;  %v3082_v19 = vld [vmem:[%s3573_s1 + $0x70] sm:$0xff]  ;;  %v3090_v26 = vld [vmem:[%s3573_s1 + $0x68] sm:$0xff] }
 0x15a   :  { %2313 = vpow2.f32 %v2024_v31  ;;  %v2028_v43 = vmul.f32 -1.442695, %v1340_v33  ;;  %v2030_v48 = vmul.f32 -1.442695, %v1342_v34  ;;  %3588 = vst [vmem:[#allocation7_spill] sm:$0xff] %v3082_v19  ;;  %v1318_v20 = vld [vmem:[%s3574_s3 + $0x70] sm:$0xff] }
 0x15b   :  { %2315 = vpow2.f32 %v2026_v32  ;;  %v2029_v51 = vmul.f32 -1.442695, %v1341_v39  ;;  %v2031_v53 = vmul.f32 -1.442695, %v1343_v40  ;;  %3589 = vst [vmem:[#allocation8_spill] sm:$0xff] %v3090_v26  ;;  %v1317_v27 = vld [vmem:[%s3574_s3 + $0x68] sm:$0xff] }
 0x15c   :  { %2317 = vpow2.f32 %v2025_v37  ;;  %v1334_v37 = vmul.f32 %v1318_v20, %v3082_v19 }
 0x15d   :  { %2319 = vpow2.f32 %v2027_v38  ;;  %v913_v54 = vpop.f32.mrb[4].mxu0  ;;  %v1139_v55 = vpop.f32.mrb[4].mxu1  ;;  %v1512_v38 = vld [vmem:[%s3574_s3 + $0x80] sm:$0xff] }
 0x15e   :  { %2321 = vpow2.f32 %v2028_v43  ;;  %v1344_v58 = vadd.f32 %v1328_v44, %v913_v54  ;;  %v1346_v60 = vadd.f32 %v1330_v45, %v1139_v55  ;;  %v915_v62 = vpop.f32.mrb[5].mxu0  ;;  %v1141_v0 = vpop.f32.mrb[5].mxu1  ;;  %v1333_v43 = vmul.f32 %v1317_v27, %v3090_v26  ;;  %v1514_v44 = vld [vmem:[%s3574_s3 + $0x90] sm:$0xff]  ;;  %v1515_v54 = vld [vmem:[%s3574_s3 + $0x98] sm:$0xff] }
 0x15f   :  { %2323 = vpow2.f32 %v2030_v48  ;;  %v917_v4 = vpop.f32.mrb[6].mxu0  ;;  %v1143_v6 = vpop.f32.mrb[6].mxu1  ;;  %v1345_v8 = vadd.f32 %v1329_v52, %v915_v62  ;;  %v1347_v13 = vadd.f32 %v1331_v56, %v1141_v0  ;;  %v1516_v62 = vld [vmem:[%s3574_s3 + $0xa0] sm:$0xff] }
 0x160   :  { %2325 = vpow2.f32 %v2029_v51  ;;  %v2032_v7 = vmul.f32 -1.442695, %v1344_v58  ;;  %v919_v10 = vpop.f32.mrb[7].mxu0  ;;  %v3077_v11 = vpop.f32.mrb[7].mxu1  ;;  %v2034_v12 = vmul.f32 -1.442695, %v1346_v60  ;;  %v1348_v14 = vadd.f32 %v1332_v2, %v917_v4 }
 0x161   :  { %2327 = vpow2.f32 %v2031_v53  ;;  %v2033_v16 = vmul.f32 -1.442695, %v1345_v8  ;;  %v2035_v18 = vmul.f32 -1.442695, %v1347_v13  ;;  %v1528_v53 = vmul.f32 %v1512_v38, %v2963_v57  ;;  %v1517_v13 = vld [vmem:[%s3574_s3 + $0xa8] sm:$0xff] }
 0x162   :  { %2329 = vpow2.f32 %v2032_v7  ;;  %v2036_v25 = vmul.f32 -1.442695, %v1348_v14  ;;  %v1350_v58 = vadd.f32 %v1334_v37, %v1143_v6  ;;  %v1530_v60 = vmul.f32 %v1514_v44, %v2971_v59  ;;  %v1518_v7 = vld [vmem:[%s3574_s3 + $0xb0] sm:$0xff] }
 0x163   :  { %2331 = vpow2.f32 %v2034_v12  ;;  %v1349_v2 = vadd.f32 %v1333_v43, %v919_v10  ;;  %v1529_v4 = vmul.f32 %v1513_v50, %v2979_v61  ;;  %v1531_v6 = vmul.f32 %v1515_v54, %v2987_v63  ;;  %v1319_v43 = vld [vmem:[%s3574_s3 + $0x78] sm:$0xff]  ;;  %v1520_v54 = vld [vmem:[%s3574_s3 + $0xc0] sm:$0xff] }
 0x164   :  { %v2314_v15 = vpop.eup %2313  ;;  %2333 = vpow2.f32 %v2033_v16  ;;  %v1519_v50 = vld [vmem:[%s3574_s3 + $0xb8] sm:$0xff] }
 0x165   :  { %v2316_v17 = vpop.eup %2315  ;;  %v923_v21 = vpop.f32.mrb[8].mxu0  ;;  %v1400_v32 = vadd.f32 1.0, %v2314_v15  ;;  %2335 = vpow2.f32 %v2035_v18  ;;  %v1532_v18 = vmul.f32 %v1516_v62, %v2995_v1 }
 0x166   :  { %v1149_v22 = vpop.f32.mrb[8].mxu1  ;;  %v2318_v24 = vpop.eup %2317  ;;  %v1402_v36 = vadd.f32 1.0, %v2316_v17  ;;  %2337 = vpow2.f32 %v2036_v25  ;;  %v1544_v17 = vadd.f32 %v1528_v53, %v923_v21  ;;  %v2038_v25 = vmul.f32 -1.442695, %v1350_v58  ;;  %v1522_v58 = vld [vmem:[%s3574_s3 + $0xd0] sm:$0xff] }
 0x167   :  { %v925_v28 = vpop.f32.mrb[9].mxu0  ;;  %v3095_v30 = vpop.f32.mrb[9].mxu1  ;;  %v1401_v42 = vadd.f32 1.0, %v2318_v24  ;;  %2339 = vrcp.f32 %v1400_v32  ;;  %v1546_v27 = vadd.f32 %v1530_v60, %v1149_v22  ;;  %v1533_v21 = vmul.f32 %v1517_v13, %v3011_v5  ;;  %v3154_v22 = vld [vmem:[%s3573_s1 + $0x78] sm:$0xff] }
 0x168   :  { %v2320_v31 = vpop.eup %2319  ;;  %v3097_v33 = vpop.f32.mrb[10].mxu0  ;;  %2341 = vrcp.f32 %v1402_v36  ;;  %v2037_v36 = vmul.f32 -1.442695, %v1349_v2  ;;  %v1545_v37 = vadd.f32 %v1529_v4, %v925_v28  ;;  %3590 = vst [vmem:[#allocation9_spill] sm:$0xff] %v3154_v22  ;;  %v1547_v44 = vadd.f32 %v1531_v6, %v3095_v30 }
 0x169   :  { %v3099_v34 = vpop.f32.mrb[10].mxu1  ;;  %v2322_v35 = vpop.eup %2321  ;;  %v1403_v48 = vadd.f32 1.0, %v2320_v31  ;;  %2343 = vrcp.f32 %v1401_v42  ;;  %v1534_v31 = vmul.f32 %v1518_v7, %v3003_v3  ;;  %v2040_v28 = vmul.f32 -1.442695, %v1544_v17 }
 0x16a   :  { %v3105_v39 = vpop.f32.mrb[11].mxu0  ;;  %v2324_v40 = vpop.eup %2323  ;;  %v1404_v52 = vadd.f32 1.0, %v2322_v35  ;;  %v1335_v30 = vmul.f32 %v1319_v43, %v3154_v22  ;;  %v1535_v2 = vmul.f32 %v1519_v50, %v3021_v9  ;;  %v1536_v6 = vmul.f32 %v1520_v54, %v3035_v23 }
 0x16b   :  { %v3111_v45 = vpop.f32.mrb[11].mxu1  ;;  %v2326_v47 = vpop.eup %2325  ;;  %v1406_v56 = vadd.f32 1.0, %v2324_v40  ;;  %2345 = vrcp.f32 %v1403_v48  ;;  %v1548_v48 = vadd.f32 %v1532_v18, %v3097_v33  ;;  %v1550_v53 = vadd.f32 %v1534_v31, %v3099_v34 }
 0x16c   :  { %v2328_v51 = vpop.eup %2327  ;;  %v1405_v0 = vadd.f32 1.0, %v2326_v47  ;;  %2347 = vrcp.f32 %v1404_v52  ;;  %v2042_v52 = vmul.f32 -1.442695, %v1546_v27  ;;  %v1549_v33 = vadd.f32 %v1533_v21, %v3105_v39 }
 0x16d   :  { %v2330_v55 = vpop.eup %2329  ;;  %v3128_v8 = vpop.f32.mrb[12].mxu0  ;;  %v1407_v12 = vadd.f32 1.0, %v2328_v51  ;;  %2349 = vrcp.f32 %v1406_v56  ;;  %v2041_v56 = vmul.f32 -1.442695, %v1545_v37  ;;  %v2044_v39 = vmul.f32 -1.442695, %v1548_v48 }
 0x16e   :  { %v3134_v14 = vpop.f32.mrb[12].mxu1  ;;  %v3136_v15 = vpop.f32.mrb[13].mxu0  ;;  %v1408_v16 = vadd.f32 1.0, %v2330_v55  ;;  %2351 = vrcp.f32 %v1405_v0  ;;  %v2043_v0 = vmul.f32 -1.442695, %v1547_v44  ;;  %v1538_v18 = vmul.f32 %v1522_v58, %v3043_v29 }
 0x16f   :  { %v2332_v10 = vpop.eup %2331  ;;  %v3139_v20 = vpop.f32.mrb[13].mxu1  ;;  %2353 = vrcp.f32 %v1407_v12  ;;  %v2046_v17 = vmul.f32 -1.442695, %v1550_v53  ;;  %v2045_v37 = vmul.f32 -1.442695, %v1549_v33  ;;  %v1551_v43 = vadd.f32 %v1535_v2, %v3111_v45 }
 0x170   :  { %v3141_v24 = vpop.f32.mrb[14].mxu0  ;;  %v3144_v32 = vpop.f32.mrb[14].mxu1  ;;  %v1410_v42 = vadd.f32 1.0, %v2332_v10  ;;  %2355 = vrcp.f32 %v1408_v16  ;;  %v1552_v48 = vadd.f32 %v1536_v6, %v3128_v8  ;;  %v1523_v6 = vld [vmem:[%s3574_s3 + $0xd8] sm:$0xff] }
 0x171   :  { %v3146_v35 = vpop.f32.mrb[15].mxu0  ;;  %v3149_v38 = vpop.f32.mrb[15].mxu1  ;;  %2357 = vpow2.f32 %v2038_v25  ;;  %v1539_v29 = vmul.f32 %v1523_v6, %v3061_v46 }
 0x172   :  { %v2334_v40 = vpop.eup %2333  ;;  %2359 = vpow2.f32 %v2037_v36  ;;  %v1351_v36 = vadd.f32 %v1335_v30, %v3077_v11  ;;  %v1554_v11 = vadd.f32 %v1538_v18, %v3134_v14  ;;  %v1521_v14 = vld [vmem:[%s3574_s3 + $0xc8] sm:$0xff] }
 0x173   :  { %v2336_v47 = vpop.eup %2335  ;;  %2361 = vrcp.f32 %v1410_v42  ;;  %v1409_v42 = vadd.f32 1.0, %v2334_v40 }
 0x174   :  { %v2338_v51 = vpop.eup %2337  ;;  %2363 = vpow2.f32 %v2040_v28  ;;  %v1411_v28 = vadd.f32 1.0, %v2336_v47  ;;  %v2039_v54 = vmul.f32 -1.442695, %v1351_v36  ;;  %v2047_v47 = vmul.f32 -1.442695, %v1551_v43 }
 0x175   :  { %v3168_v55 = vpop.eup %2339  ;;  %v3175_v60 = vpop.f32.mrb[16].mxu0  ;;  %2365 = vpow2.f32 %v2042_v52  ;;  %v1412_v52 = vadd.f32 1.0, %v2338_v51  ;;  %v2048_v51 = vmul.f32 -1.442695, %v1552_v48  ;;  %v1537_v48 = vmul.f32 %v1521_v14, %v3051_v41 }
 0x176   :  { %v3177_v62 = vpop.f32.mrb[16].mxu1  ;;  %v3179_v34 = vpop.eup %2341  ;;  %2367 = vpow2.f32 %v2041_v56 }
 0x177   :  { %v3182_v4 = vpop.f32.mrb[17].mxu0  ;;  %v3184_v7 = vpop.f32.mrb[17].mxu1  ;;  %2369 = vpow2.f32 %v2043_v0 }
 0x178   :  { %v3186_v12 = vpop.eup %2343  ;;  %v3189_v13 = vpop.f32.mrb[18].mxu0  ;;  %2371 = vpow2.f32 %v2044_v39  ;;  %v2050_v39 = vmul.f32 -1.442695, %v1554_v11 }
 0x179   :  { %v3191_v10 = vpop.f32.mrb[18].mxu1  ;;  %v3193_v16 = vpop.eup %2345  ;;  %2373 = vpow2.f32 %v2046_v17 }
 0x17a   :  { %v3196_v25 = vpop.f32.mrb[19].mxu0  ;;  %v3198_v27 = vpop.f32.mrb[19].mxu1  ;;  %2375 = vpow2.f32 %v2045_v37 }
 0x17b   :  { %v3200_v31 = vpop.eup %2347  ;;  %2377 = vrcp.f32 %v1409_v42  ;;  %v1524_v42 = vld [vmem:[%s3574_s3 + $0xe0] sm:$0xff] }
 0x17c   :  { %v3203_v21 = vpop.eup %2349  ;;  %2379 = vrcp.f32 %v1411_v28 }
 0x17d   :  { %v3206_v44 = vpop.eup %2351  ;;  %v3214_v40 = vpop.f32.mrb[20].mxu0  ;;  %2381 = vrcp.f32 %v1412_v52  ;;  %v1526_v52 = vld [vmem:[%s3574_s3 + $0xf0] sm:$0xff] }
 0x17e   :  { %v3209_v50 = vpop.eup %2353  ;;  %v3216_v30 = vpop.f32.mrb[20].mxu1  ;;  %2383 = vpow2.f32 %v2039_v54  ;;  %v1525_v54 = vld [vmem:[%s3574_s3 + $0xe8] sm:$0xff] }
 0x17f   :  { %v3212_v53 = vpop.eup %2355  ;;  %v3218_v56 = vpop.f32.mrb[21].mxu0  ;;  %2385 = vpow2.f32 %v2047_v47  ;;  %v1540_v47 = vmul.f32 %v1524_v42, %v3069_v49  ;;  %v1541_v42 = vmul.f32 %v1525_v54, %v3090_v26 }
 0x180   :  { %v2358_v45 = vpop.eup %2357  ;;  %v3220_v8 = vpop.f32.mrb[21].mxu1  ;;  %2387 = vpow2.f32 %v2048_v51  ;;  %v1542_v51 = vmul.f32 %v1526_v52, %v3082_v19  ;;  %v1555_v52 = vadd.f32 %v1539_v29, %v3139_v20 }
 0x181   :  { %v2360_v33 = vpop.eup %2359  ;;  %v3225_v58 = vpop.f32.mrb[22].mxu0  ;;  %v1414_v37 = vadd.f32 1.0, %v2358_v45  ;;  %2389 = vpow2.f32 %v2050_v39  ;;  %v1553_v39 = vadd.f32 %v1537_v48, %v3136_v15  ;;  %v1556_v48 = vadd.f32 %v1540_v47, %v3141_v24 }
 0x182   :  { %3591 = vst [vmem:[#allocation10_spill] sm:$0xff] %v3225_v58  ;;  %v3227_v0 = vpop.f32.mrb[22].mxu1  ;;  %v3229_v2 = vpop.eup %2361  ;;  %v1413_v28 = vadd.f32 1.0, %v2360_v33  ;;  %v1527_v33 = vld [vmem:[%s3574_s3 + $0xf8] sm:$0xff]  ;;  %v1558_v29 = vadd.f32 %v1542_v51, %v3144_v32 }
 0x183   :  { %3592 = vst [vmem:[#allocation11_spill] sm:$0xff] %v3227_v0  ;;  %3593 = vst [vmem:[#allocation12_spill] sm:$0xff] %v3229_v2  ;;  %v3234_v17 = vpop.f32.mrb[23].mxu0  ;;  %v3236_v18 = vpop.f32.mrb[23].mxu1  ;;  %2391 = vrcp.f32 %v1414_v37  ;;  %v2052_v26 = vmul.f32 -1.442695, %v1556_v48 }
 0x184   :  { %3594 = vst [vmem:[#allocation13_spill] sm:$0xff] %v3234_v17  ;;  %3595 = vst [vmem:[#allocation14_spill] sm:$0xff] %v3236_v18  ;;  %v2364_v36 = vpop.eup %2363  ;;  %2393 = vrcp.f32 %v1413_v28 }
 0x185   :  { %v2366_v43 = vpop.eup %2365  ;;  %v1608_v2 = vadd.f32 1.0, %v2364_v36  ;;  %v3254_v36 = vpop.f32.mrb[24].mxu0 }
 0x186   :  { %v2368_v11 = vpop.eup %2367  ;;  %v1610_v18 = vadd.f32 1.0, %v2366_v43  ;;  %v3256_v6 = vpop.f32.mrb[24].mxu1 }
 0x187   :  { %v2370_v45 = vpop.eup %2369  ;;  %v1609_v41 = vadd.f32 1.0, %v2368_v11  ;;  %v3260_v43 = vpop.f32.mrb[25].mxu0  ;;  %2395 = vrcp.f32 %v1608_v2  ;;  %v1543_v11 = vmul.f32 %v1527_v33, %v3154_v22  ;;  %v1557_v22 = vadd.f32 %v1541_v42, %v3146_v35 }
 0x188   :  { %v2372_v14 = vpop.eup %2371  ;;  %v1611_v17 = vadd.f32 1.0, %v2370_v45  ;;  %v3262_v49 = vpop.f32.mrb[25].mxu1  ;;  %2397 = vrcp.f32 %v1610_v18 }
 0x189   :  { %v2374_v46 = vpop.eup %2373  ;;  %v1612_v37 = vadd.f32 1.0, %v2372_v14  ;;  %v3266_v19 = vpop.f32.mrb[26].mxu0  ;;  %2399 = vrcp.f32 %v1609_v41  ;;  %v2049_v14 = vmul.f32 -1.442695, %v1553_v39  ;;  %v1559_v24 = vadd.f32 %v1543_v11, %v3149_v38 }
 0x18a   :  { %v2376_v0 = vpop.eup %2375  ;;  %v3268_v58 = vpop.f32.mrb[26].mxu1  ;;  %v1614_v15 = vadd.f32 1.0, %v2374_v46  ;;  %2401 = vrcp.f32 %v1611_v17  ;;  %v2051_v46 = vmul.f32 -1.442695, %v1555_v52  ;;  %v2053_v17 = vmul.f32 -1.442695, %v1557_v22 }
 0x18b   :  { %v3270_v28 = vpop.eup %2377  ;;  %v3273_v54 = vpop.f32.mrb[27].mxu0  ;;  %v1613_v2 = vadd.f32 1.0, %v2376_v0  ;;  %2403 = vrcp.f32 %v1612_v37  ;;  %v2054_v0 = vmul.f32 -1.442695, %v1558_v29  ;;  %v2055_v38 = vmul.f32 -1.442695, %v1559_v24 }
 0x18c   :  { %v3275_v45 = vpop.eup %2379  ;;  %v3278_v20 = vpop.f32.mrb[27].mxu1  ;;  %2405 = vrcp.f32 %v1614_v15 }
 0x18d   :  { %3596 = vst [vmem:[#allocation15_spill] sm:$0xff] %v3278_v20  ;;  %v3280_v33 = vpop.eup %2381  ;;  %2407 = vrcp.f32 %v1613_v2  ;;  %v3284_v32 = vpop.f32.mrb[28].mxu0 }
 0x18e   :  { %v2384_v18 = vpop.eup %2383  ;;  %v3286_v51 = vpop.f32.mrb[28].mxu1  ;;  %2409 = vpow2.f32 %v2049_v14 }
 0x18f   :  { %v2386_v47 = vpop.eup %2385  ;;  %v3288_v39 = vpop.f32.mrb[29].mxu0  ;;  %2411 = vpow2.f32 %v2051_v46 }
 0x190   :  { %v2388_v41 = vpop.eup %2387  ;;  %v3290_v35 = vpop.f32.mrb[29].mxu1  ;;  %2413 = vpow2.f32 %v2052_v26 }
 0x191   :  { %v2390_v20 = vpop.eup %2389  ;;  %3597 = vst [vmem:[#allocation16_spill] sm:$0xff] %v3290_v35  ;;  %v3294_v37 = vpop.f32.mrb[30].mxu0  ;;  %2415 = vpow2.f32 %v2054_v0 }
 0x192   :  { %v3292_v42 = vpop.eup %2391  ;;  %3598 = vst [vmem:[#allocation17_spill] sm:$0xff] %v3294_v37  ;;  %v3296_v52 = vpop.f32.mrb[30].mxu1  ;;  %2417 = vpow2.f32 %v2053_v17  ;;  %v1616_v17 = vadd.f32 1.0, %v2388_v41 }
 0x193   :  { %3599 = vst [vmem:[#allocation18_spill] sm:$0xff] %v3296_v52  ;;  %v3298_v11 = vpop.eup %2393  ;;  %v3300_v15 = vpop.f32.mrb[31].mxu0  ;;  %2419 = vpow2.f32 %v2055_v38  ;;  %v1415_v52 = vadd.f32 1.0, %v2384_v18 }
 0x194   :  { %3600 = vst [vmem:[#allocation19_spill] sm:$0xff] %v3300_v15  ;;  %v3302_v48 = vpop.f32.mrb[31].mxu1  ;;  %v2396_v22 = vpop.eup %2395  ;;  %2421 = vtanh.f32 %v3175_v60  ;;  %v1615_v15 = vadd.f32 1.0, %v2386_v47  ;;  %v1618_v60 = vadd.f32 1.0, %v2390_v20 }
 0x195   :  { %3601 = vst [vmem:[#allocation20_spill] sm:$0xff] %v3302_v48  ;;  %v2398_v2 = vpop.eup %2397  ;;  %2423 = vtanh.f32 %v3177_v62 }
 0x196   :  { %v2400_v29 = vpop.eup %2399  ;;  %2425 = vtanh.f32 %v3182_v4 }
 0x197   :  { %v2402_v14 = vpop.eup %2401  ;;  %2427 = vtanh.f32 %v3184_v7  ;;  %v1656_v7 = vmul.f32 %v2396_v22, %v2963_v57 }
 0x198   :  { %v2404_v46 = vpop.eup %2403  ;;  %2429 = vtanh.f32 %v3189_v13  ;;  %v1658_v13 = vmul.f32 %v2398_v2, %v2971_v59  ;;  %v1659_v20 = vmul.f32 %v2402_v14, %v2987_v63 }
 0x199   :  { %v2406_v24 = vpop.eup %2405  ;;  %2431 = vtanh.f32 %v3191_v10  ;;  %v1657_v10 = vmul.f32 %v2400_v29, %v2979_v61 }
 0x19a   :  { %v2408_v26 = vpop.eup %2407  ;;  %2433 = vtanh.f32 %v3196_v25  ;;  %v1662_v22 = vmul.f32 %v2406_v24, %v3003_v3 }
 0x19b   :  { %v2410_v48 = vpop.eup %2409  ;;  %2435 = vrcp.f32 %v1415_v52 }
 0x19c   :  { %v2412_v0 = vpop.eup %2411  ;;  %v1617_v37 = vadd.f32 1.0, %v2410_v48  ;;  %2437 = vrcp.f32 %v1615_v15  ;;  %v1660_v15 = vmul.f32 %v2404_v46, %v2995_v1 }
 0x19d   :  { %v2414_v38 = vpop.eup %2413  ;;  %v1619_v18 = vadd.f32 1.0, %v2412_v0  ;;  %2439 = vrcp.f32 %v1616_v17 }
 0x19e   :  { %v2416_v62 = vpop.eup %2415  ;;  %2441 = vrcp.f32 %v1618_v60  ;;  %v1620_v25 = vadd.f32 1.0, %v2414_v38  ;;  %v1722_v60 = vld [vmem:[%s3574_s3 + $0x110] sm:$0xff] }
 0x19f   :  { %v2418_v4 = vpop.eup %2417  ;;  %2443 = vrcp.f32 %v1617_v37  ;;  %v1622_v0 = vadd.f32 1.0, %v2416_v62 }
 0x1a0   :  { %v2420_v35 = vpop.eup %2419  ;;  %2445 = vrcp.f32 %v1619_v18  ;;  %v1621_v59 = vadd.f32 1.0, %v2418_v4  ;;  %v1721_v18 = vld [vmem:[%s3574_s3 + $0x108] sm:$0xff] }
 0x1a1   :  { %v2422_v47 = vpop.eup %2421  ;;  %2447 = vtanh.f32 %v3198_v27  ;;  %v1623_v37 = vadd.f32 1.0, %v2420_v35 }
 0x1a2   :  { %v2424_v41 = vpop.eup %2423  ;;  %v1480_v52 = vmul.f32 %v2422_v47, %v3168_v55  ;;  %2449 = vtanh.f32 %v3214_v40 }
 0x1a3   :  { %v2426_v48 = vpop.eup %2425  ;;  %v1482_v57 = vmul.f32 %v2424_v41, %v3179_v34  ;;  %2451 = vrcp.f32 %v1620_v25  ;;  %v1724_v41 = vld [vmem:[%s3574_s3 + $0x120] sm:$0xff]  ;;  %v3602_v25 = vld [vmem:[#allocation10_spill] sm:$0xff] }
 0x1a4   :  { %v2428_v17 = vpop.eup %2427  ;;  %v1672_v2 = vadd.f32 %v1656_v7, %v1480_v52  ;;  %v1481_v61 = vmul.f32 %v2426_v48, %v3186_v12  ;;  %v1661_v12 = vmul.f32 %v2408_v26, %v3011_v5  ;;  %2453 = vrcp.f32 %v1622_v0  ;;  %v1726_v52 = vld [vmem:[%s3574_s3 + $0x130] sm:$0xff] }
 0x1a5   :  { %v2430_v63 = vpop.eup %2429  ;;  %v1674_v29 = vadd.f32 %v1658_v13, %v1482_v57  ;;  %v1483_v55 = vmul.f32 %v2428_v17, %v3193_v16  ;;  %2455 = vrcp.f32 %v1621_v59  ;;  %v3604_v57 = vld [vmem:[#allocation13_spill] sm:$0xff]  ;;  %v1742_v59 = vadd.f32 %v1726_v52, %v3268_v58  ;;  %v1725_v58 = vld [vmem:[%s3574_s3 + $0x128] sm:$0xff]  ;;  %v1727_v52 = vld [vmem:[%s3574_s3 + $0x138] sm:$0xff] }
 0x1a6   :  { %v2432_v1 = vpop.eup %2431  ;;  %1688 = vst [vmem:[%s3575_s5] sm:$0xff] %v1672_v2  ;;  %v1673_v3 = vadd.f32 %v1657_v10, %v1481_v61  ;;  %v1484_v34 = vmul.f32 %v2430_v63, %v3200_v31  ;;  %2457 = vrcp.f32 %v1623_v37  ;;  %v1723_v10 = vld [vmem:[%s3574_s3 + $0x118] sm:$0xff] }
 0x1a7   :  { %v2434_v14 = vpop.eup %2433  ;;  %1690 = vst [vmem:[%s3575_s5 + $0x10] sm:$0xff] %v1674_v29  ;;  %v1675_v16 = vadd.f32 %v1659_v20, %v1483_v55  ;;  %v1486_v27 = vmul.f32 %v2432_v1, %v3203_v21  ;;  %2459 = vtanh.f32 %v1672_v2 }
 0x1a8   :  { %v3332_v40 = vpop.eup %2435  ;;  %1689 = vst [vmem:[%s3575_s5 + $0x8] sm:$0xff] %v1673_v3  ;;  %v1676_v35 = vadd.f32 %v1660_v15, %v1484_v34  ;;  %v1485_v31 = vmul.f32 %v2434_v14, %v3206_v44  ;;  %2461 = vtanh.f32 %v1674_v29  ;;  %v1720_v44 = vld [vmem:[%s3574_s3 + $0x100] sm:$0xff]  ;;  %v3607_v34 = vld [vmem:[#allocation4_spill] sm:$0xff]  ;;  %v2062_v14 = vmul.f32 -1.442695, %v1742_v59 }
 0x1a9   :  { %v2438_v5 = vpop.eup %2437  ;;  %1691 = vst [vmem:[%s3575_s5 + $0x18] sm:$0xff] %v1675_v16  ;;  %v3341_v46 = vadd.f32 %v1662_v22, %v1486_v27  ;;  %2463 = vtanh.f32 %v1673_v3  ;;  %v1736_v13 = vadd.f32 %v1720_v44, %v3254_v36  ;;  %v1737_v36 = vadd.f32 %v1721_v18, %v3260_v43  ;;  %v3606_v29 = vld [vmem:[#allocation3_spill] sm:$0xff]  ;;  %v3608_v27 = vld [vmem:[#allocation12_spill] sm:$0xff]  ;;  %v3610_v44 = vld [vmem:[#allocation6_spill] sm:$0xff] }
 0x1aa   :  { %v2440_v24 = vpop.eup %2439  ;;  %1692 = vst [vmem:[%s3575_s5 + $0x20] sm:$0xff] %v1676_v35  ;;  %v3346_v21 = vadd.f32 %v1661_v12, %v1485_v31  ;;  %v1663_v4 = vmul.f32 %v2438_v5, %v3021_v9  ;;  %2465 = vtanh.f32 %v3216_v30  ;;  %v1738_v30 = vadd.f32 %v1722_v60, %v3256_v6  ;;  %v3609_v31 = vld [vmem:[#allocation5_spill] sm:$0xff] }
 0x1ab   :  { %v2442_v26 = vpop.eup %2441  ;;  %1694 = vst [vmem:[%s3575_s5 + $0x30] sm:$0xff] %v3341_v46  ;;  %v1664_v47 = vmul.f32 %v2440_v24, %v3035_v23  ;;  %2467 = vtanh.f32 %v3218_v56  ;;  %v1739_v6 = vadd.f32 %v1723_v10, %v3262_v49  ;;  %v2056_v22 = vmul.f32 -1.442695, %v1736_v13 }
 0x1ac   :  { %v2444_v38 = vpop.eup %2443  ;;  %1693 = vst [vmem:[%s3575_s5 + $0x28] sm:$0xff] %v3346_v21  ;;  %2469 = vtanh.f32 %v3220_v8  ;;  %v3603_v8 = vld [vmem:[#allocation11_spill] sm:$0xff]  ;;  %v2058_v43 = vmul.f32 -1.442695, %v1738_v30  ;;  %v2057_v49 = vmul.f32 -1.442695, %v1737_v36  ;;  %v1666_v55 = vmul.f32 %v2442_v26, %v3606_v29 }
 0x1ad   :  { %v2446_v62 = vpop.eup %2445  ;;  %2471 = vtanh.f32 %v3602_v25  ;;  %v2059_v63 = vmul.f32 -1.442695, %v1739_v6  ;;  %v1665_v12 = vmul.f32 %v2444_v38, %v3607_v34 }
 0x1ae   :  { %v2448_v7 = vpop.eup %2447  ;;  %2473 = vtanh.f32 %v3603_v8  ;;  %v1667_v5 = vmul.f32 %v2446_v62, %v3609_v31  ;;  %v1728_v8 = vld [vmem:[%s3574_s3 + $0x140] sm:$0xff]  ;;  %v1734_v31 = vld [vmem:[%s3574_s3 + $0x170] sm:$0xff] }
 0x1af   :  { %v2450_v20 = vpop.eup %2449  ;;  %v1487_v9 = vmul.f32 %v2448_v7, %v3209_v50  ;;  %2475 = vtanh.f32 %v3604_v57 }
 0x1b0   :  { %v2452_v23 = vpop.eup %2451  ;;  %v1488_v56 = vmul.f32 %v2450_v20, %v3212_v53  ;;  %v1740_v53 = vadd.f32 %v1724_v41, %v3266_v19  ;;  %2477 = vtanh.f32 %v1675_v16  ;;  %v3605_v19 = vld [vmem:[#allocation14_spill] sm:$0xff] }
 0x1b1   :  { %v2454_v50 = vpop.eup %2453  ;;  %v1679_v15 = vadd.f32 %v1663_v4, %v1487_v9  ;;  %2479 = vtanh.f32 %v1676_v35  ;;  %v1668_v60 = vmul.f32 %v2452_v23, %v3610_v44  ;;  %v1741_v4 = vadd.f32 %v1725_v58, %v3273_v54  ;;  %v3612_v9 = vld [vmem:[#allocation8_spill] sm:$0xff]  ;;  %v3616_v44 = vld [vmem:[#allocation17_spill] sm:$0xff] }
 0x1b2   :  { %v2456_v48 = vpop.eup %2455  ;;  %v1680_v0 = vadd.f32 %v1664_v47, %v1488_v56  ;;  %2481 = vtanh.f32 %v3605_v19  ;;  %v2060_v1 = vmul.f32 -1.442695, %v1740_v53  ;;  %v3611_v47 = vld [vmem:[#allocation7_spill] sm:$0xff]  ;;  %v3613_v56 = vld [vmem:[#allocation9_spill] sm:$0xff]  ;;  %v1744_v19 = vadd.f32 %v1728_v8, %v3284_v32 }
 0x1b3   :  { %v2458_v17 = vpop.eup %2457  ;;  %1695 = vst [vmem:[%s3575_s5 + $0x38] sm:$0xff] %v1679_v15  ;;  %2483 = vpow2.f32 %v2056_v22  ;;  %v1670_v13 = vmul.f32 %v2454_v50, %v3611_v47  ;;  %v1669_v30 = vmul.f32 %v2456_v48, %v3612_v9  ;;  %v3614_v53 = vld [vmem:[#allocation15_spill] sm:$0xff] }
 0x1b4   :  { %v3393_v2 = vpop.eup %2459  ;;  %1696 = vst [vmem:[%s3575_s5 + $0x40] sm:$0xff] %v1680_v0  ;;  %2485 = vpow2.f32 %v2058_v43  ;;  %v1671_v25 = vmul.f32 %v2458_v17, %v3613_v56  ;;  %v1743_v17 = vadd.f32 %v1727_v52, %v3614_v53  ;;  %v1729_v43 = vld [vmem:[%s3574_s3 + $0x148] sm:$0xff]  ;;  %v1732_v32 = vld [vmem:[%s3574_s3 + $0x160] sm:$0xff] }
 0x1b5   :  { %v3398_v61 = vpop.eup %2461  ;;  %2487 = vpow2.f32 %v2057_v49  ;;  %v1745_v34 = vadd.f32 %v1729_v43, %v3288_v39  ;;  %v1733_v39 = vld [vmem:[%s3574_s3 + $0x168] sm:$0xff] }
 0x1b6   :  { %v3401_v37 = vpop.eup %2463  ;;  %2489 = vpow2.f32 %v2059_v63  ;;  %v1731_v63 = vld [vmem:[%s3574_s3 + $0x158] sm:$0xff] }
 0x1b7   :  { %v2466_v3 = vpop.eup %2465  ;;  %2491 = vpow2.f32 %v2060_v1 }
 0x1b8   :  { %v2468_v16 = vpop.eup %2467  ;;  %v1490_v35 = vmul.f32 %v2466_v3, %v3608_v27  ;;  %2493 = vpow2.f32 %v2062_v14  ;;  %v3615_v27 = vld [vmem:[#allocation16_spill] sm:$0xff] }
 0x1b9   :  { %v2470_v24 = vpop.eup %2469  ;;  %v1489_v26 = vmul.f32 %v2468_v16, %v3270_v28  ;;  %2495 = vtanh.f32 %v3341_v46  ;;  %v2063_v16 = vmul.f32 -1.442695, %v1743_v17 }
 0x1ba   :  { %v2472_v18 = vpop.eup %2471  ;;  %v1682_v7 = vadd.f32 %v1666_v55, %v1490_v35  ;;  %v1491_v38 = vmul.f32 %v2470_v24, %v3275_v45  ;;  %2497 = vtanh.f32 %v3346_v21  ;;  %v2061_v21 = vmul.f32 -1.442695, %v1741_v4  ;;  %v1735_v4 = vld [vmem:[%s3574_s3 + $0x178] sm:$0xff] }
 0x1bb   :  { %v2474_v10 = vpop.eup %2473  ;;  %v1681_v20 = vadd.f32 %v1665_v12, %v1489_v26  ;;  %v1492_v62 = vmul.f32 %v2472_v18, %v3280_v33  ;;  %2499 = vtanh.f32 %v1679_v15  ;;  %v1747_v35 = vadd.f32 %v1731_v63, %v3615_v27 }
 0x1bc   :  { %v2476_v28 = vpop.eup %2475  ;;  %1698 = vst [vmem:[%s3575_s5 + $0x50] sm:$0xff] %v1682_v7  ;;  %v1683_v54 = vadd.f32 %v1667_v5, %v1491_v38  ;;  %v1494_v45 = vmul.f32 %v2474_v10, %v3292_v42  ;;  %2501 = vtanh.f32 %v1680_v0  ;;  %v1730_v0 = vld [vmem:[%s3574_s3 + $0x150] sm:$0xff]  ;;  %v2064_v5 = vmul.f32 -1.442695, %v1744_v19  ;;  %v3617_v38 = vld [vmem:[#allocation18_spill] sm:$0xff] }
 0x1bd   :  { %v3422_v41 = vpop.eup %2477  ;;  %1697 = vst [vmem:[%s3575_s5 + $0x48] sm:$0xff] %v1681_v20  ;;  %v3428_v33 = vadd.f32 %v1668_v60, %v1492_v62  ;;  %v1493_v23 = vmul.f32 %v2476_v28, %v3298_v11  ;;  %2503 = vtanh.f32 %v1682_v7  ;;  %v1746_v1 = vadd.f32 %v1730_v0, %v3286_v51 }
 0x1be   :  { %v3431_v46 = vpop.eup %2479  ;;  %1699 = vst [vmem:[%s3575_s5 + $0x58] sm:$0xff] %v1683_v54  ;;  %v3436_v42 = vadd.f32 %v1670_v13, %v1494_v45  ;;  %2505 = vtanh.f32 %v1681_v20  ;;  %v1748_v60 = vadd.f32 %v1732_v32, %v3616_v44  ;;  %v2065_v7 = vmul.f32 -1.442695, %v1745_v34  ;;  %v3618_v20 = vld [vmem:[#allocation19_spill] sm:$0xff] }
 0x1bf   :  { %v2482_v36 = vpop.eup %2481  ;;  %1700 = vst [vmem:[%s3575_s5 + $0x60] sm:$0xff] %v3428_v33  ;;  %v3443_v11 = vadd.f32 %v1669_v30, %v1493_v23  ;;  %2507 = vpow2.f32 %v2061_v21  ;;  %v2066_v26 = vmul.f32 -1.442695, %v1746_v1  ;;  %v1750_v47 = vadd.f32 %v1734_v31, %v3617_v38  ;;  %v3619_v30 = vld [vmem:[#allocation20_spill] sm:$0xff] }
 0x1c0   :  { %v2484_v50 = vpop.eup %2483  ;;  %1702 = vst [vmem:[%s3575_s5 + $0x70] sm:$0xff] %v3436_v42  ;;  %v1495_v15 = vmul.f32 %v2482_v36, %v3332_v40  ;;  %v2067_v10 = vmul.f32 -1.442695, %v1747_v35  ;;  %v1749_v62 = vadd.f32 %v1733_v39, %v3618_v20  ;;  %v1751_v28 = vadd.f32 %v1735_v4, %v3619_v30 }
 0x1c1   :  { %v2486_v6 = vpop.eup %2485  ;;  %1701 = vst [vmem:[%s3575_s5 + $0x68] sm:$0xff] %v3443_v11  ;;  %v1800_v48 = vadd.f32 1.0, %v2484_v50  ;;  %v2068_v45 = vmul.f32 -1.442695, %v1748_v60 }
 0x1c2   :  { %v2488_v57 = vpop.eup %2487  ;;  %v3463_v22 = vadd.f32 %v1671_v25, %v1495_v15  ;;  %v1802_v40 = vadd.f32 1.0, %v2486_v6  ;;  %v2070_v25 = vmul.f32 -1.442695, %v1750_v47  ;;  %v2069_v52 = vmul.f32 -1.442695, %v1749_v62 }
 0x1c3   :  { %v2490_v59 = vpop.eup %2489  ;;  %2509 = vrcp.f32 %v1800_v48  ;;  %v1801_v49 = vadd.f32 1.0, %v2488_v57  ;;  %v2071_v15 = vmul.f32 -1.442695, %v1751_v28 }
 0x1c4   :  { %v2492_v29 = vpop.eup %2491  ;;  %2511 = vtanh.f32 %v1683_v54  ;;  %1703 = vst [vmem:[%s3575_s5 + $0x78] sm:$0xff] %v3463_v22  ;;  %v1803_v55 = vadd.f32 1.0, %v2490_v59 }
 0x1c5   :  { %v2494_v58 = vpop.eup %2493  ;;  %2513 = vrcp.f32 %v1802_v40  ;;  %v1804_v3 = vadd.f32 1.0, %v2492_v29 }
 0x1c6   :  { %v2496_v12 = vpop.eup %2495  ;;  %2515 = vrcp.f32 %v1801_v49  ;;  %v1806_v14 = vadd.f32 1.0, %v2494_v58 }
 0x1c7   :  { %v3486_v51 = vpop.eup %2497  ;;  %2517 = vrcp.f32 %v1803_v55 }
 0x1c8   :  { %v3491_v24 = vpop.eup %2499  ;;  %2519 = vrcp.f32 %v1804_v3 }
 0x1c9   :  { %v3497_v18 = vpop.eup %2501  ;;  %2521 = vrcp.f32 %v1806_v14 }
 0x1ca   :  { %v3500_v13 = vpop.eup %2503  ;;  %2523 = vpow2.f32 %v2063_v16 }
 0x1cb   :  { %v3503_v9 = vpop.eup %2505  ;;  %2525 = vpow2.f32 %v2064_v5 }
 0x1cc   :  { %v2508_v54 = vpop.eup %2507  ;;  %2527 = vpow2.f32 %v2066_v26 }
 0x1cd   :  { %v2510_v23 = vpop.eup %2509  ;;  %v1805_v56 = vadd.f32 1.0, %v2508_v54  ;;  %2529 = vpow2.f32 %v2065_v7 }
 0x1ce   :  { %v3506_v21 = vpop.eup %2511  ;;  %v1864_v36 = vmul.f32 %v2510_v23, %v3393_v2  ;;  %2531 = vpow2.f32 %v2067_v10 }
 0x1cf   :  { %v2514_v50 = vpop.eup %2513  ;;  %2533 = vrcp.f32 %v1805_v56 }
 0x1d0   :  { %v2516_v8 = vpop.eup %2515  ;;  %1880 = vst [vmem:[%s3576_s4] sm:$0xff] %v1864_v36  ;;  %v1866_v6 = vmul.f32 %v2514_v50, %v3398_v61  ;;  %2535 = vpow2.f32 %v2068_v45 }
 0x1d1   :  { %v2518_v48 = vpop.eup %2517  ;;  %v1865_v0 = vmul.f32 %v2516_v8, %v3401_v37  ;;  %2537 = vpow2.f32 %v2070_v25 }
 0x1d2   :  { %v2520_v57 = vpop.eup %2519  ;;  %1882 = vst [vmem:[%s3576_s4 + $0x10] sm:$0xff] %v1866_v6  ;;  %v1867_v2 = vmul.f32 %v2518_v48, %v3422_v41  ;;  %2539 = vpow2.f32 %v2069_v52 }
 0x1d3   :  { %v2522_v40 = vpop.eup %2521  ;;  %1881 = vst [vmem:[%s3576_s4 + $0x8] sm:$0xff] %v1865_v0  ;;  %v1868_v61 = vmul.f32 %v2520_v57, %v3431_v46  ;;  %2541 = vpow2.f32 %v2071_v15 }
 0x1d4   :  { %v2524_v53 = vpop.eup %2523  ;;  %2543 = vtanh.f32 %v3428_v33  ;;  %1883 = vst [vmem:[%s3576_s4 + $0x18] sm:$0xff] %v1867_v2  ;;  %v1870_v37 = vmul.f32 %v2522_v40, %v2496_v12 }
 0x1d5   :  { %v2526_v17 = vpop.eup %2525  ;;  %2545 = vtanh.f32 %v3436_v42  ;;  %1884 = vst [vmem:[%s3576_s4 + $0x20] sm:$0xff] %v1868_v61  ;;  %v1807_v41 = vadd.f32 1.0, %v2524_v53 }
 0x1d6   :  { %v2528_v43 = vpop.eup %2527  ;;  %2547 = vtanh.f32 %v3443_v11  ;;  %1886 = vst [vmem:[%s3576_s4 + $0x30] sm:$0xff] %v1870_v37  ;;  %v1808_v33 = vadd.f32 1.0, %v2526_v17 }
 0x1d7   :  { %v2530_v46 = vpop.eup %2529  ;;  %2549 = vrcp.f32 %v1807_v41  ;;  %v1810_v59 = vadd.f32 1.0, %v2528_v43 }
 0x1d8   :  { %v2532_v49 = vpop.eup %2531  ;;  %2551 = vrcp.f32 %v1808_v33  ;;  %v1809_v19 = vadd.f32 1.0, %v2530_v46 }
 0x1d9   :  { %v2534_v42 = vpop.eup %2533  ;;  %2553 = vrcp.f32 %v1810_v59  ;;  %v1811_v63 = vadd.f32 1.0, %v2532_v49 }
 0x1da   :  { %v2536_v29 = vpop.eup %2535  ;;  %v1869_v55 = vmul.f32 %v2534_v42, %v3486_v51  ;;  %2555 = vrcp.f32 %v1809_v19 }
 0x1db   :  { %v2538_v1 = vpop.eup %2537  ;;  %2557 = vrcp.f32 %v1811_v63  ;;  %v1812_v11 = vadd.f32 1.0, %v2536_v29 }
 0x1dc   :  { %v2540_v58 = vpop.eup %2539  ;;  %2559 = vtanh.f32 %v3463_v22  ;;  %1885 = vst [vmem:[%s3576_s4 + $0x28] sm:$0xff] %v1869_v55  ;;  %v1814_v3 = vadd.f32 1.0, %v2538_v1 }
 0x1dd   :  { %v2542_v34 = vpop.eup %2541  ;;  %2561 = vrcp.f32 %v1812_v11  ;;  %v1813_v32 = vadd.f32 1.0, %v2540_v58 }
 0x1de   :  { %v2544_v12 = vpop.eup %2543  ;;  %2563 = vrcp.f32 %v1814_v3  ;;  %v1815_v14 = vadd.f32 1.0, %v2542_v34 }
 0x1df   :  { %v2546_v16 = vpop.eup %2545  ;;  %2565 = vrcp.f32 %v1813_v32 }
 0x1e0   :  { %v2548_v27 = vpop.eup %2547  ;;  %2567 = vrcp.f32 %v1815_v14 }
 0x1e1   :  { %v2550_v35 = vpop.eup %2549 }
 0x1e2   :  { %v2552_v31 = vpop.eup %2551  ;;  %v1871_v51 = vmul.f32 %v2550_v35, %v3491_v24 }
 0x1e3   :  { %v2554_v22 = vpop.eup %2553  ;;  %v1872_v5 = vmul.f32 %v2552_v31, %v3497_v18 }
 0x1e4   :  { %v2556_v39 = vpop.eup %2555  ;;  %1887 = vst [vmem:[%s3576_s4 + $0x38] sm:$0xff] %v1871_v51  ;;  %v1874_v26 = vmul.f32 %v2554_v22, %v3500_v13 }
 0x1e5   :  { %v2558_v44 = vpop.eup %2557  ;;  %1888 = vst [vmem:[%s3576_s4 + $0x40] sm:$0xff] %v1872_v5  ;;  %v1873_v60 = vmul.f32 %v2556_v39, %v3503_v9 }
 0x1e6   :  { %v2560_v4 = vpop.eup %2559  ;;  %1890 = vst [vmem:[%s3576_s4 + $0x50] sm:$0xff] %v1874_v26  ;;  %v1875_v24 = vmul.f32 %v2558_v44, %v3506_v21 }
 0x1e7   :  { %v2562_v18 = vpop.eup %2561  ;;  %1889 = vst [vmem:[%s3576_s4 + $0x48] sm:$0xff] %v1873_v60 }
 0x1e8   :  { %v2564_v7 = vpop.eup %2563  ;;  %1891 = vst [vmem:[%s3576_s4 + $0x58] sm:$0xff] %v1875_v24  ;;  %v1876_v38 = vmul.f32 %v2562_v18, %v2544_v12 }
 0x1e9   :  { %v2566_v47 = vpop.eup %2565  ;;  %v1878_v13 = vmul.f32 %v2564_v7, %v2546_v16 }
 0x1ea   :  { %v2568_v10 = vpop.eup %2567  ;;  %1892 = vst [vmem:[%s3576_s4 + $0x60] sm:$0xff] %v1876_v38  ;;  %v1877_v20 = vmul.f32 %v2566_v47, %v2548_v27 }
 0x1eb   :  { %1894 = vst [vmem:[%s3576_s4 + $0x70] sm:$0xff] %v1878_v13  ;;  %v1879_v62 = vmul.f32 %v2568_v10, %v2560_v4 }
 0x1ec   :  { %1893 = vst [vmem:[%s3576_s4 + $0x68] sm:$0xff] %v1877_v20 }
 0x1ed   :  { %1895 = vst [vmem:[%s3576_s4 + $0x78] sm:$0xff] %v1879_v62 }

</bundles_post_ra>
